<compile_context>
chip_gen: v7x
topology: tpu7x:2x2x1
jax: 0.10.0
libtpu: 0.0.40
codegen_flags: <defaults>
</compile_context>

<pallas_src>
import jax
import jax.numpy as jnp
import numpy as np
from jax.experimental import pallas as pl
from jax.experimental.pallas import tpu as pltpu

BN_EPS = 1e-5
LANE = 128


def _round_up(x, m):
    return (x + m - 1) // m * m


def _vmem_limit_bytes():
    cap = 64 * 1024 * 1024                      # conservative fallback (v7x per-TC VMEM)
    try:
        cap = int(pltpu.get_tpu_info().vmem_capacity_bytes)
    except Exception:
        pass
    # ~48 MiB on v7x (64 MiB physical), capped at 96 MiB on v5e/v6e (128 MiB physical).
    return max(32 * 1024 * 1024, min(cap * 3 // 4, 96 * 1024 * 1024))


def _tile_vmem_bytes(tr, W, Cin, COP, Cout, Wh, mxu_bytes):
    rows = 2 * tr                                # conv rows per tile
    r = rows * W                                 # matmul LHS rows per tile
    inp = 2 * (rows + 2) * (W + 2) * Cin * mxu_bytes      # double-buffered haloed input blocks
    wgt = 9 * Cin * COP * mxu_bytes                        # single-buffered resident weight
    patches = r * 9 * Cin * mxu_bytes                      # in-VMEM im2col value
    acts = 3 * r * COP * 4                                 # f32 matmul result + BN/pool temps
    outb = 2 * tr * Wh * Cout * 4                          # double-buffered pooled output block
    return inp + wgt + patches + acts + outb


def _select_tile_rows(Hh, W, Cin, COP, Cout, Wh, mxu_bytes, budget):
    """Largest divisor of Hh (pool rows per tile) whose VMEM footprint fits the budget."""
    for tr in range(Hh, 0, -1):
        if Hh % tr == 0 and _tile_vmem_bytes(tr, W, Cin, COP, Cout, Wh, mxu_bytes) <= budget:
            return tr
    return 1


# ---------- shared: in-VMEM im2col + one K-deep MXU matmul over a haloed row block ----------
def _conv_tile(xm_ref, xh_ref, w_ref):
    # xm_ref: (1, 2*TR, W+2, Cin)  main padded input rows for this tile
    # xh_ref: (1, 2,    W+2, Cin)  2-row bottom halo
    # w_ref : (9*Cin, COP)         folded conv weight, K ordered (kh, kw, cin)
    rows = xm_ref.shape[1]                     # 2*TR conv rows
    wpad = xm_ref.shape[2]                     # W + 2
    cin = xm_ref.shape[3]
    w_out = wpad - 2                           # W
    xb = jnp.concatenate([xm_ref[0], xh_ref[0]], axis=0)          # (rows+2, W+2, Cin)
    taps = [xb[kh:kh + rows, kw:kw + w_out, :]                     # 9 contiguous tap slices
            for kh in range(3) for kw in range(3)]
    patches = jnp.concatenate(taps, axis=-1).reshape(rows * w_out, 9 * cin)
    return jnp.dot(patches, w_ref[...], preferred_element_type=jnp.float32)  # (rows*W, COP) f32


# ---------- Pass 1: conv + per-channel batch statistics (per-core resident accumulator) ----------
def conv_stats_kernel(xm_ref, xh_ref, w_ref, stats_ref):
    # stats_ref: (1, 2, COP)  row 0 = sum, row 1 = sum of squares (this core's slice)
    @pl.when((pl.program_id(1) == 0) & (pl.program_id(2) == 0))
    def _init():
        stats_ref[...] = jnp.zeros_like(stats_ref)

    y = _conv_tile(xm_ref, xh_ref, w_ref)                          # (R, COP) f32
    s = jnp.sum(y, axis=0, keepdims=True)
    ss = jnp.sum(y * y, axis=0, keepdims=True)
    stats_ref[0] = stats_ref[0] + jnp.concatenate([s, ss], axis=0)


# ---------- Pass 2: conv (recomputed) + BN scale/shift + ReLU + 2x2 max pool ----------
def conv_bn_relu_pool_kernel(xm_ref, xh_ref, w_ref, scale_ref, shift_ref, o_ref):
    y = _conv_tile(xm_ref, xh_ref, w_ref)                          # (2*TR*W, COP) f32
    r, cop = y.shape
    # Hoist the (1, COP) -> (R, COP) broadcasts once per tile.
    scale = jnp.broadcast_to(scale_ref[...], (r, cop))
    shift = jnp.broadcast_to(shift_ref[...], (r, cop))
    a = jnp.maximum(y * scale + shift, 0.0)                        # BN + ReLU
    a = jnp.maximum(a[0::2], a[1::2])                              # pool along W (W even)
    tr, wh, cout = o_ref.shape[1], o_ref.shape[2], o_ref.shape[3]
    a = a.reshape(2 * tr, wh, cop)
    pooled = jnp.maximum(a[0::2], a[1::2])                         # pool along H
    o_ref[0] = pooled[:, :, :cout].astype(o_ref.dtype)             # unpadded Cout store


def conv_block_forward(x_nchw, w, b, gamma, beta, *, mxu_dtype=jnp.bfloat16):
    """ConvBlock forward. x_nchw: (N, Cin, H, W) f32 -> (N, Cout, H//2, W//2) f32.

    `b` (conv bias) is accepted for API parity but unused: under training-mode BatchNorm the
    bias cancels exactly (the batch mean absorbs it, the variance is unaffected).
    """
    del b
    N, Cin, H, W = x_nchw.shape
    Cout = w.shape[0]
    assert H % 2 == 0 and W % 2 == 0, "MaxPool2d(2,2) expects even spatial dims"
    Hh, Wh = H // 2, W // 2
    K = 9 * Cin
    COP = _round_up(Cout, LANE)
    mxu_bytes = jnp.dtype(mxu_dtype).itemsize

    vmem_limit = _vmem_limit_bytes()
    TR = _select_tile_rows(Hh, W, Cin, COP, Cout, Wh, mxu_bytes, budget=vmem_limit // 2)
    n_rb = Hh // TR                                   # row blocks per image
    S = 2 if (N % 2 == 0 and N >= 2) else 1           # per-core split of pass-1 stats (v7x)
    Ns = N // S

    # ---- layout prep (cheap, ~|x| traffic): NCHW -> padded NHWC, MXU operand dtype ----
    x = jnp.transpose(x_nchw, (0, 2, 3, 1))
    xpad = jnp.pad(x, ((0, 0), (1, 1), (1, 1), (0, 0))).astype(mxu_dtype)  # (N, H+2, W+2, Cin)

    w2 = jnp.transpose(w, (2, 3, 1, 0)).reshape(K, Cout).astype(jnp.float32)  # (kh,kw,cin) x Cout
    w2 = jnp.pad(w2, ((0, 0), (0, COP - Cout))).astype(mxu_dtype)             # (9*Cin, COP)

    # ---- pass 1: conv + per-channel sum / sum-of-squares (per-core slices, summed below) ----
    stats = pl.pallas_call(
        conv_stats_kernel,
        grid=(S, Ns, n_rb),
        in_specs=[
            pl.BlockSpec((1, 2 * TR, W + 2, Cin),
                         lambda c, n, r: (c * Ns + n, r, 0, 0)),
            pl.BlockSpec((1, 2, W + 2, Cin),
                         lambda c, n, r: (c * Ns + n, (r + 1) * TR, 0, 0)),
            pl.BlockSpec((K, COP), lambda c, n, r: (0, 0),
                         pipeline_mode=pl.Buffered(1)),
        ],
        out_specs=pl.BlockSpec((1, 2, COP), lambda c, n, r: (c, 0, 0)),
        out_shape=jax.ShapeDtypeStruct((S, 2, COP), jnp.float32),
        compiler_params=pltpu.CompilerParams(
            dimension_semantics=("parallel", "arbitrary", "arbitrary"),
            vmem_limit_bytes=vmem_limit),
    )(xpad, xpad, w2)

    # ---- per-channel BN coefficients from batch statistics (biased var, training mode) ----
    stats = jnp.sum(stats, axis=0)                    # sum the per-core partials -> (2, COP)
    count = float(N * H * W)
    mean = stats[0] / count
    # TODO(synk): E[y^2]-E[y]^2 can cancel for strongly non-zero-mean pre-BN activations; a
    # shifted/Welford accumulation would need an extra pass and is not materialized here.
    var = jnp.maximum(stats[1] / count - mean * mean, 0.0)
    inv = jax.lax.rsqrt(var + BN_EPS)
    g_pad = jnp.pad(gamma.astype(jnp.float32), (0, COP - Cout))
    bt_pad = jnp.pad(beta.astype(jnp.float32), (0, COP - Cout))
    scale = (g_pad * inv).reshape(1, COP)
    shift = (bt_pad - mean * g_pad * inv).reshape(1, COP)

    # ---- pass 2: conv recompute + BN + ReLU + 2x2 max pool, unpadded NHWC output ----
    out_nhwc = pl.pallas_call(
        conv_bn_relu_pool_kernel,
        grid=(N, n_rb),
        in_specs=[
            pl.BlockSpec((1, 2 * TR, W + 2, Cin), lambda n, r: (n, r, 0, 0)),
            pl.BlockSpec((1, 2, W + 2, Cin), lambda n, r: (n, (r + 1) * TR, 0, 0)),
            pl.BlockSpec((K, COP), lambda n, r: (0, 0), pipeline_mode=pl.Buffered(1)),
            pl.BlockSpec((1, COP), lambda n, r: (0, 0)),
            pl.BlockSpec((1, COP), lambda n, r: (0, 0)),
        ],
        out_specs=pl.BlockSpec((1, TR, Wh, Cout), lambda n, r: (n, r, 0, 0)),
        out_shape=jax.ShapeDtypeStruct((N, Hh, Wh, Cout), jnp.float32),
        compiler_params=pltpu.CompilerParams(
            dimension_semantics=("parallel", "parallel"),
            vmem_limit_bytes=vmem_limit),
    )(xpad, xpad, w2, scale, shift)

    return jnp.transpose(out_nhwc, (0, 3, 1, 2))       # back to NCHW
    # TODO(synk): BatchNorm running_mean/running_var buffer updates are a training-time side
    # effect that does not affect this forward output; not materialized here.


def reference_forward(x, w, b, gamma, beta, eps=BN_EPS):
    """Pure-JAX reference matching PyTorch ConvBlock.forward (training-mode BN)."""
    y = jax.lax.conv_general_dilated(
        x, w, window_strides=(1, 1), padding=((1, 1), (1, 1)),
        dimension_numbers=("NCHW", "OIHW", "NCHW"))
    y = y + b[None, :, None, None]
    mean = jnp.mean(y, axis=(0, 2, 3), keepdims=True)
    var = jnp.mean((y - mean) ** 2, axis=(0, 2, 3), keepdims=True)   # biased variance
    y = (y - mean) * jax.lax.rsqrt(var + eps)
    y = y * gamma[None, :, None, None] + beta[None, :, None, None]
    y = jnp.maximum(y, 0.0)
    y = jax.lax.reduce_window(y, -jnp.inf, jax.lax.max,
                              (1, 1, 2, 2), (1, 1, 2, 2), "VALID")
    return y


if __name__ == "__main__":
    N, Cin, Cout, H, W = 2, 4, 8, 16, 16

    key = jax.random.PRNGKey(0)
    kx, kw, kb = jax.random.split(key, 3)
    x = jax.random.normal(kx, (N, Cin, H, W), jnp.float32)
    w = jax.random.normal(kw, (Cout, Cin, 3, 3), jnp.float32) * 0.1   # conv weight
    b = jax.random.normal(kb, (Cout,), jnp.float32) * 0.1             # conv bias
    gamma = jnp.ones((Cout,), jnp.float32)                            # BN weight init
    beta = jnp.zeros((Cout,), jnp.float32)                            # BN bias init

    ref = jax.block_until_ready(reference_forward(x, w, b, gamma, beta))

    # f32 MXU operand path (exact): tight tolerance vs. reference.
    out_f32 = jax.block_until_ready(
        conv_block_forward(x, w, b, gamma, beta, mxu_dtype=jnp.float32))
    assert out_f32.shape == (N, Cout, H // 2, W // 2), out_f32.shape
    np.testing.assert_allclose(np.asarray(out_f32), np.asarray(ref), rtol=1e-4, atol=1e-4)

    # default bf16 MXU operand path (v5e/v6e/v7x perf mode): f32 accumulation/BN, looser tolerance.
    out_bf16 = jax.block_until_ready(conv_block_forward(x, w, b, gamma, beta))
    np.testing.assert_allclose(np.asarray(out_bf16), np.asarray(ref), rtol=5e-2, atol=5e-2)

    print("KERNEL_OK")
</pallas_src>

<mosaic_0001>
module attributes {stable_mosaic.version = 11 : i64} {
  func.func @conv_stats_kernel(%arg0: i32, %arg1: i32, %arg2: i32, %arg3: memref<1x16x18x4xf32, #tpu.memory_space<vmem>>, %arg4: memref<1x2x18x4xf32, #tpu.memory_space<vmem>>, %arg5: memref<36x128xf32, #tpu.memory_space<vmem>>, %arg6: memref<1x2x128xf32, #tpu.memory_space<vmem>>) attributes {dimension_semantics = [#tpu.dimension_semantics<parallel>, #tpu.dimension_semantics<arbitrary>, #tpu.dimension_semantics<arbitrary>], iteration_bounds = array<i64: 2, 1, 1>, scalar_prefetch = 0 : i64, scratch_operands = 0 : i64, tpu.core_type = #tpu.core_type<tc>, window_params = [{transform_indices = @transform_0, window_bounds = array<i64: 1, 16, 18, 4>}, {transform_indices = @transform_1, window_bounds = array<i64: 1, 2, 18, 4>}, {pipeline_mode = #tpu.pipeline_mode<synchronous>, transform_indices = @transform_2, window_bounds = array<i64: 36, 128>}, {transform_indices = @transform_3, window_bounds = array<i64: 1, 2, 128>}]} {
    %c0_i32 = arith.constant 0 : i32
    %0 = arith.cmpi eq, %arg1, %c0_i32 : i32
    %c0_i32_0 = arith.constant 0 : i32
    %1 = arith.cmpi eq, %arg2, %c0_i32_0 : i32
    %2 = arith.andi %0, %1 : i1
    %3 = arith.extui %2 : i1 to i32
    %c0_i32_1 = arith.constant 0 : i32
    %4 = arith.cmpi ne, %3, %c0_i32_1 : i32
    scf.if %4 {
      %cst_19 = arith.constant 0.000000e+00 : f32
      %35 = vector.broadcast %cst_19 : f32 to vector<1x2x128xf32>
      %c0_20 = arith.constant 0 : index
      %c0_21 = arith.constant 0 : index
      %c0_22 = arith.constant 0 : index
      %36 = vector.load %arg6[%c0_20, %c0_21, %c0_22] : memref<1x2x128xf32, #tpu.memory_space<vmem>>, vector<1x2x128xf32>
      tpu.vector_store %arg6[%c0_20, %c0_21, %c0_22], %35 {strides = array<i32>} : memref<1x2x128xf32, #tpu.memory_space<vmem>>, vector<1x2x128xf32>,
    } else {
    }
    %c0 = arith.constant 0 : index
    %c0_2 = arith.constant 0 : index
    %c0_3 = arith.constant 0 : index
    %c0_4 = arith.constant 0 : index
    %5 = vector.load %arg3[%c0, %c0_2, %c0_3, %c0_4] : memref<1x16x18x4xf32, #tpu.memory_space<vmem>>, vector<1x16x18x4xf32>
    %6 = vector.shape_cast %5 : vector<1x16x18x4xf32> to vector<16x18x4xf32>
    %c0_5 = arith.constant 0 : index
    %c0_6 = arith.constant 0 : index
    %c0_7 = arith.constant 0 : index
    %c0_8 = arith.constant 0 : index
    %7 = vector.load %arg4[%c0_5, %c0_6, %c0_7, %c0_8] : memref<1x2x18x4xf32, #tpu.memory_space<vmem>>, vector<1x2x18x4xf32>
    %8 = vector.shape_cast %7 : vector<1x2x18x4xf32> to vector<2x18x4xf32>
    %9 = tpu.concatenate %6, %8 in 0 : vector<16x18x4xf32>, vector<2x18x4xf32> -> vector<18x18x4xf32>
    %10 = vector.extract_strided_slice %9 {offsets = [0, 0, 0], sizes = [16, 16, 4], strides = [1, 1, 1]} : vector<18x18x4xf32> to vector<16x16x4xf32>
    %11 = vector.extract_strided_slice %9 {offsets = [0, 1, 0], sizes = [16, 16, 4], strides = [1, 1, 1]} : vector<18x18x4xf32> to vector<16x16x4xf32>
    %12 = vector.extract_strided_slice %9 {offsets = [0, 2, 0], sizes = [16, 16, 4], strides = [1, 1, 1]} : vector<18x18x4xf32> to vector<16x16x4xf32>
    %13 = vector.extract_strided_slice %9 {offsets = [1, 0, 0], sizes = [16, 16, 4], strides = [1, 1, 1]} : vector<18x18x4xf32> to vector<16x16x4xf32>
    %14 = vector.extract_strided_slice %9 {offsets = [1, 1, 0], sizes = [16, 16, 4], strides = [1, 1, 1]} : vector<18x18x4xf32> to vector<16x16x4xf32>
    %15 = vector.extract_strided_slice %9 {offsets = [1, 2, 0], sizes = [16, 16, 4], strides = [1, 1, 1]} : vector<18x18x4xf32> to vector<16x16x4xf32>
    %16 = vector.extract_strided_slice %9 {offsets = [2, 0, 0], sizes = [16, 16, 4], strides = [1, 1, 1]} : vector<18x18x4xf32> to vector<16x16x4xf32>
    %17 = vector.extract_strided_slice %9 {offsets = [2, 1, 0], sizes = [16, 16, 4], strides = [1, 1, 1]} : vector<18x18x4xf32> to vector<16x16x4xf32>
    %18 = vector.extract_strided_slice %9 {offsets = [2, 2, 0], sizes = [16, 16, 4], strides = [1, 1, 1]} : vector<18x18x4xf32> to vector<16x16x4xf32>
    %19 = tpu.concatenate %10, %11, %12, %13, %14, %15, %16, %17, %18 in 2 : vector<16x16x4xf32>, vector<16x16x4xf32>, vector<16x16x4xf32>, vector<16x16x4xf32>, vector<16x16x4xf32>, vector<16x16x4xf32>, vector<16x16x4xf32>, vector<16x16x4xf32>, vector<16x16x4xf32> -> vector<16x16x36xf32>
    %20 = vector.shape_cast %19 : vector<16x16x36xf32> to vector<256x36xf32>
    %c0_9 = arith.constant 0 : index
    %c0_10 = arith.constant 0 : index
    %21 = vector.load %arg5[%c0_9, %c0_10] : memref<36x128xf32, #tpu.memory_space<vmem>>, vector<36x128xf32>
    %cst = arith.constant dense<0.000000e+00> : vector<256x128xf32>
    %22 = tpu.matmul %20, %21, %cst {dimension_numbers = #tpu.dot_dimension_numbers<[1], [0], [0], [1], [0, 0, 1, 1], [], []>} : vector<256x36xf32>, vector<36x128xf32>, vector<256x128xf32> -> vector<256x128xf32>
    %cst_11 = arith.constant dense<0.000000e+00> : vector<128xf32>
    %23 = vector.multi_reduction <add>, %22, %cst_11 [0] : vector<256x128xf32> to vector<128xf32>
    %24 = vector.shape_cast %23 : vector<128xf32> to vector<1x128xf32>
    %25 = arith.mulf %22, %22 : vector<256x128xf32>
    %cst_12 = arith.constant dense<0.000000e+00> : vector<128xf32>
    %26 = vector.multi_reduction <add>, %25, %cst_12 [0] : vector<256x128xf32> to vector<128xf32>
    %27 = vector.shape_cast %26 : vector<128xf32> to vector<1x128xf32>
    %c0_13 = arith.constant 0 : index
    %c0_14 = arith.constant 0 : index
    %c0_15 = arith.constant 0 : index
    %28 = vector.load %arg6[%c0_13, %c0_14, %c0_15] : memref<1x2x128xf32, #tpu.memory_space<vmem>>, vector<1x2x128xf32>
    %29 = vector.shape_cast %28 : vector<1x2x128xf32> to vector<2x128xf32>
    %30 = tpu.concatenate %24, %27 in 0 : vector<1x128xf32>, vector<1x128xf32> -> vector<2x128xf32>
    %31 = arith.addf %29, %30 : vector<2x128xf32>
    %c0_16 = arith.constant 0 : index
    %c0_17 = arith.constant 0 : index
    %c0_18 = arith.constant 0 : index
    %32 = vector.load %arg6[%c0_16, %c0_17, %c0_18] : memref<1x2x128xf32, #tpu.memory_space<vmem>>, vector<1x2x128xf32>
    %33 = vector.shape_cast %32 : vector<1x2x128xf32> to vector<2x128xf32>
    %34 = vector.shape_cast %31 : vector<2x128xf32> to vector<1x2x128xf32>
    tpu.vector_store %arg6[%c0_16, %c0_17, %c0_18], %34 {strides = array<i32>} : memref<1x2x128xf32, #tpu.memory_space<vmem>>, vector<1x2x128xf32>,
    return
  }
  func.func @transform_0(%arg0: i32, %arg1: i32, %arg2: i32) -> (i32, i32, i32, i32) {
    %c1_i32 = arith.constant 1 : i32
    %0 = arith.muli %arg0, %c1_i32 : i32
    %1 = arith.addi %0, %arg1 : i32
    %c0_i32 = arith.constant 0 : i32
    %c0_i32_0 = arith.constant 0 : i32
    %c0_i32_1 = arith.constant 0 : i32
    return %1, %arg2, %c0_i32, %c0_i32_0 : i32, i32, i32, i32
  }
  func.func @transform_1(%arg0: i32, %arg1: i32, %arg2: i32) -> (i32, i32, i32, i32) {
    %c1_i32 = arith.constant 1 : i32
    %0 = arith.muli %arg0, %c1_i32 : i32
    %1 = arith.addi %0, %arg1 : i32
    %c1_i32_0 = arith.constant 1 : i32
    %2 = arith.addi %arg2, %c1_i32_0 : i32
    %c8_i32 = arith.constant 8 : i32
    %3 = arith.muli %2, %c8_i32 : i32
    %c0_i32 = arith.constant 0 : i32
    %c0_i32_1 = arith.constant 0 : i32
    %c0_i32_2 = arith.constant 0 : i32
    return %1, %3, %c0_i32, %c0_i32_1 : i32, i32, i32, i32
  }
  func.func @transform_2(%arg0: i32, %arg1: i32, %arg2: i32) -> (i32, i32) {
    %c0_i32 = arith.constant 0 : i32
    %c0_i32_0 = arith.constant 0 : i32
    %c0_i32_1 = arith.constant 0 : i32
    return %c0_i32, %c0_i32_0 : i32, i32
  }
  func.func @transform_3(%arg0: i32, %arg1: i32, %arg2: i32) -> (i32, i32, i32) {
    %c0_i32 = arith.constant 0 : i32
    %c0_i32_0 = arith.constant 0 : i32
    %c0_i32_1 = arith.constant 0 : i32
    return %arg0, %c0_i32, %c0_i32_0 : i32, i32, i32
  }
}

</mosaic_0001>

<bundles_post_ra>
// kernel: tpu_custom_call.1
= control target key start
LH: loop header
LB: loop body
LE: loop exit
PB: predicated region body
PF: predicated region fallthrough
CT: control target
= control target key end

     0   :  { %8 = vsyncpa [#allocation3], 0  ;;  %s4157_s0 = inlined_call_operand.vmem [shape: f32[2,18,18,4], index: 0, kind: input, shape index: {}]   ;;  %s4158_s1 = inlined_call_operand.vmem [shape: f32[2,18,18,4], index: 1, kind: input, shape index: {}]   ;;  %s4159_s2 = inlined_call_operand.vmem [shape: f32[36,128], index: 2, kind: input, shape index: {}]   ;;  %s4160_s3 = inlined_call_operand.hbm [shape: f32[2,2,128], index: 3, kind: output, shape index: {}]  }
   0x1   :  { %10 = vsyncpa [#allocation3 + $0x1], 0  ;;  %s2536_s12 = smov 0   ;;  %s2538_s13 = smov 0  }
   0x2   :  { %s2540_s14 = smov 0   ;;  %s2542_s15 = smov 0  }
   0x3   :  { %s2544_s16 = smov 0   ;;  %s2546_s17 = smov 0  }
   0x4 LB: > { %s2184_s18 = sadd.s32 4294967295, %s2504_s17   ;;  %s2185_s19 = sadd.s32 4294967294, %s2504_s17   ;;  %s2504_s17 = sphi %s2546_s17, %s16_s17   ;;  %s2500_s16 = sphi %s2544_s16, %s4374_s16   ;;  %s2496_s15 = sphi %s2542_s15, %s4373_s15   ;;  %s2492_s14 = sphi %s2540_s14, %s4372_s14   ;;  %s2488_s13 = sphi %s2538_s13, %s4371_s13   ;;  %s2484_s12 = sphi %s2536_s12, %s4370_s12  }
   0x5   : > { %s35_s20 = sadd.s32 1, %s2500_s16  ;;  %s127_s21 = sadd.s32 1, %s2492_s14 }
   0x6   : > { %p37_p0 = scmp.ge.s32.totalorder %s35_s20, 2  ;;  %p137_p1 = scmp.ne.s32.totalorder %s2492_s14, %s2488_s13 }
   0x7   : > { %p138_p2 = scmp.eq.s32.totalorder %s2184_s18, 1  ;;  %p143_p3 = scmp.ne.s32.totalorder %s2488_s13, %s2484_s12 }
   0x8   : > { %s4376_s20 = smov (%p37_p0, %s35_s20), 0  ;;  %p144_p5 = scmp.eq.s32.totalorder %s2185_s19, 1 }
   0x9   : > { %p2576_p4 = por %p138_p2, %p137_p1  ;;  %s124_s23 = ssub.s32 %s2500_s16, %s4376_s20 }
   0xa   : > { %p2188_p6 = scmp.ge.s32.totalorder %s2504_s17, 1  ;;  %p125_p7 = scmp.eq.s32.totalorder %s124_s23, 0 }
   0xb   : > { %p2583_p8 = por %p144_p5, %p143_p3  ;;  %p211_p9 = scmp.lt.s32.totalorder %s2504_s17, 3 }
   0xc   : > { %s2589_s25 = scalar_select %p125_p7, %s2492_s14, %s127_s21  }
   0xd   : > { %p212_p10 = pnand %p2188_p6, %p211_p9 }
   0xf   : > { %215 = sbr.rel (%p212_p10) target bundleno = 907 (0x38b), region = 32 }
  0x16   : > { %p266_p11 = scmp.lt.s32.totalorder %s2496_s15, 1  ;;  %vm408_vm0 = vcmask 1046528   ;;  %s2506_s4 = smov 4   ;;  %vm585_vm1 = vcmask 1045504   ;;  %vm1730_vm2 = vcmask 1043456   ;;  %vm1364_vm3 = vcmask 31744  }
  0x17   : > { %s2507_s5 = smov 8   ;;  %s2508_s6 = smov 12   ;;  %vm1397_vm4 = vcmask 64512   ;;  %vm1430_vm5 = vcmask 97280   ;;  %vm1463_vm6 = vcmask 130048   ;;  %vm1496_vm7 = vcmask 162816  }
  0x18   : > { %s2593_s26 = scalar_select %p266_p11, %s2496_s15, 1  ;;  %vm1529_vm8 = vcmask 195584   ;;  %vm1562_vm9 = vcmask 228352   ;;  %vm1595_vm10 = vcmask 261120   ;;  %vm1633_vm11 = vcmask 293888  }
  0x19   : > { %s2509_s7 = smov 16   ;;  %s2510_s18 = smov 20   ;;  %vm2066_vm12 = vcmask 1040384  }
  0x1a   : > { %s2340_s27 = smul.u32 432, %s2593_s26  ;;  %s2511_s29 = smov 24  }
  0x1b   : > { %s2512_s8 = smov 28   ;;  %s2513_s9 = smov 32  }
  0x1c   : > { %s2601_s30 = scalar_lea.vmem %s4157_s0, %s2340_s27  ;;  %s256_s26 = sand.u32 1, %s2488_s13  }
  0x1d   : > { %v2604_v0 = vld [vmem:[%s2601_s30 + $0x18] sm:$0xff]  ;;  %v2607_v1 = vld [vmem:[%s2601_s30 + $0x20] sm:$0xff]  ;;  %v2615_v5 = vld [vmem:[%s2601_s30 + $0x8] sm:$0xff] }
  0x1e   : > { %v2610_v2 = vld [vmem:[%s2601_s30] sm:$0xff]  ;;  %v414_v3 = vrot.slane %v2604_v0, 1  ;;  %v415_v4 = vrot.slane %v2607_v1, 1  ;;  %v2619_v7 = vld [vmem:[%s2601_s30 + $0x28] sm:$0x3]  ;;  %v410_v8 = vrot.slane %v2615_v5, 1 }
  0x1f   : > { %4252 = vst [vmem:[#allocation5_spill] sm:$0xff] %v2610_v2  ;;  %v409_v6 = vrot.slane %v2610_v2, 1  ;;  %v417_v9 = vrot.slane %v2619_v7, 1  ;;  %v2624_v10 = vld [vmem:[%s2601_s30 + $0x10] sm:$0x3]  ;;  %v2627_v11 = vld [vmem:[%s2601_s30 + $0x38] sm:$0xff] }
  0x20   : > { %v2630_v12 = vsel %vm408_vm0, %v414_v3, %v415_v4  ;;  %v412_v13 = vrot.slane %v2624_v10, 1  ;;  %v2634_v14 = vld [vmem:[%s2601_s30 + $0x40] sm:$0x3]  ;;  %v2637_v15 = vld [vmem:[%s2601_s30 + $0x30] sm:$0xff]  ;;  %v420_v18 = vrot.slane %v2627_v11, 1  ;;  %v2657_v24 = vld [vmem:[%s2601_s30 + $0x48] sm:$0xff] }
  0x21   : > { %493 = vrot.lane.b32.xlu1 %v2630_v12, %s2506_s4  ;;  %v411_v16 = vsel %vm408_vm0, %v409_v6, %v410_v8  ;;  %v2644_v17 = vsel %vm408_vm0, %v415_v4, %v417_v9  ;;  %v422_v19 = vrot.slane %v2634_v14, 1  ;;  %v419_v21 = vrot.slane %v2637_v15, 1  ;;  %v2651_v22 = vld [vmem:[%s2601_s30 + $0x50] sm:$0xff]  ;;  %v2654_v23 = vld [vmem:[%s2601_s30 + $0x58] sm:$0x3]  ;;  %v2672_v30 = vld [vmem:[%s2601_s30 + $0x68] sm:$0xff] }
  0x22   : > { %489 = vrot.lane.b32.xlu0 %v411_v16, %s2506_s4  ;;  %v413_v20 = vsel %vm408_vm0, %v410_v8, %v412_v13  ;;  %v425_v26 = vrot.slane %v2651_v22, 1  ;;  %v427_v27 = vrot.slane %v2654_v23, 1  ;;  %v424_v29 = vrot.slane %v2657_v24, 1  ;;  %v2675_v31 = vld [vmem:[%s2601_s30 + $0x70] sm:$0x3]  ;;  %v2678_v32 = vld [vmem:[%s2601_s30 + $0x60] sm:$0xff] }
  0x23   : > { %v2663_v25 = vsel %vm408_vm0, %v420_v18, %v422_v19  ;;  %v2668_v28 = vsel %vm408_vm0, %v419_v21, %v420_v18  ;;  %v430_v34 = vrot.slane %v2672_v30, 1  ;;  %v432_v35 = vrot.slane %v2675_v31, 1  ;;  %v2694_v38 = vld [vmem:[%s2601_s30 + $0x80] sm:$0xff]  ;;  %v2697_v39 = vld [vmem:[%s2601_s30 + $0x88] sm:$0x3]  ;;  %v2700_v40 = vld [vmem:[%s2601_s30 + $0x78] sm:$0xff] }
  0x24   : > { %v2685_v33 = vsel %vm408_vm0, %v425_v26, %v427_v27  ;;  %v2690_v36 = vsel %vm408_vm0, %v424_v29, %v425_v26  ;;  %v429_v37 = vrot.slane %v2678_v32, 1  ;;  %v435_v42 = vrot.slane %v2694_v38, 1  ;;  %v2716_v46 = vld [vmem:[%s2601_s30 + $0x98] sm:$0xff]  ;;  %v2719_v47 = vld [vmem:[%s2601_s30 + $0xa0] sm:$0x3]  ;;  %v2722_v48 = vld [vmem:[%s2601_s30 + $0x90] sm:$0xff] }
  0x25   : > { %495 = vrot.lane.b32.xlu1 %v2644_v17, %s2506_s4  ;;  %4253 = vst [vmem:[#allocation6_spill] sm:$0xff] %v2685_v33  ;;  %v2707_v41 = vsel %vm408_vm0, %v430_v34, %v432_v35  ;;  %v437_v43 = vrot.slane %v2697_v39, 1  ;;  %v434_v45 = vrot.slane %v2700_v40, 1  ;;  %v440_v50 = vrot.slane %v2716_v46, 1  ;;  %v2738_v54 = vld [vmem:[%s2601_s30 + $0xb0] sm:$0xff]  ;;  %v2744_v56 = vld [vmem:[%s2601_s30 + $0xa8] sm:$0xff] }
  0x26   : > { %491 = vrot.lane.b32.xlu0 %v413_v20, %s2506_s4  ;;  %4254 = vst [vmem:[#allocation7_spill] sm:$0xff] %v2707_v41  ;;  %v2712_v44 = vsel %vm408_vm0, %v429_v37, %v430_v34  ;;  %v442_v51 = vrot.slane %v2719_v47, 1  ;;  %v439_v53 = vrot.slane %v2722_v48, 1  ;;  %v2741_v55 = vld [vmem:[%s2601_s30 + $0xb8] sm:$0x3]  ;;  %v445_v58 = vrot.slane %v2738_v54, 1 }
  0x27   : > { %4255 = vst [vmem:[#allocation8_spill] sm:$0xff] %v2712_v44  ;;  %v2729_v49 = vsel %vm408_vm0, %v435_v42, %v437_v43  ;;  %v2734_v52 = vsel %vm408_vm0, %v434_v45, %v435_v42  ;;  %v447_v59 = vrot.slane %v2741_v55, 1  ;;  %v444_v61 = vrot.slane %v2744_v56, 1  ;;  %v2760_v62 = vld [vmem:[%s2601_s30 + $0xc8] sm:$0xff]  ;;  %v2763_v63 = vld [vmem:[%s2601_s30 + $0xd0] sm:$0x3] }
  0x28   : > { %4256 = vst [vmem:[#allocation9_spill] sm:$0xff] %v2729_v49  ;;  %4257 = vst [vmem:[#allocation10_spill] sm:$0xff] %v2734_v52  ;;  %v2751_v57 = vsel %vm408_vm0, %v440_v50, %v442_v51  ;;  %v2756_v60 = vsel %vm408_vm0, %v439_v53, %v440_v50  ;;  %v2766_v3 = vld [vmem:[%s2601_s30 + $0xc0] sm:$0xff]  ;;  %v450_v6 = vrot.slane %v2760_v62, 1  ;;  %v452_v8 = vrot.slane %v2763_v63, 1  ;;  %v2788_v19 = vld [vmem:[%s2601_s30 + $0xd8] sm:$0xff] }
  0x29   : > { %499 = vrot.lane.b32.xlu1 %v2663_v25, %s2506_s4  ;;  %4258 = vst [vmem:[#allocation11_spill] sm:$0xff] %v2751_v57  ;;  %4259 = vst [vmem:[#allocation12_spill] sm:$0xff] %v2756_v60  ;;  %v2773_v4 = vsel %vm408_vm0, %v445_v58, %v447_v59  ;;  %v2778_v9 = vsel %vm408_vm0, %v444_v61, %v445_v58  ;;  %v449_v13 = vrot.slane %v2766_v3, 1  ;;  %v2782_v16 = vld [vmem:[%s2601_s30 + $0xe0] sm:$0xff]  ;;  %v2785_v18 = vld [vmem:[%s2601_s30 + $0xe8] sm:$0x3] }
  0x2a   : > { %497 = vrot.lane.b32.xlu0 %v2668_v28, %s2506_s4  ;;  %4260 = vst [vmem:[#allocation13_spill] sm:$0xff] %v2773_v4  ;;  %4261 = vst [vmem:[#allocation14_spill] sm:$0xff] %v2778_v9  ;;  %v2795_v20 = vsel %vm408_vm0, %v450_v6, %v452_v8  ;;  %v455_v21 = vrot.slane %v2782_v16, 1  ;;  %v457_v26 = vrot.slane %v2785_v18, 1  ;;  %v454_v29 = vrot.slane %v2788_v19, 1  ;;  %v2804_v34 = vld [vmem:[%s2601_s30 + $0xf8] sm:$0xff] }
  0x2b   : > { %4262 = vst [vmem:[#allocation15_spill] sm:$0xff] %v2795_v20  ;;  %v2800_v27 = vsel %vm408_vm0, %v449_v13, %v450_v6  ;;  %v2807_v35 = vld [vmem:[%s2601_s30 + $0x100] sm:$0x3]  ;;  %v2810_v37 = vld [vmem:[%s2601_s30 + $0xf0] sm:$0xff]  ;;  %v460_v43 = vrot.slane %v2804_v34, 1  ;;  %v2832_v59 = vld [vmem:[%s2601_s30 + $0x108] sm:$0xff] }
  0x2c   : > { %4263 = vst [vmem:[#allocation16_spill] sm:$0xff] %v2800_v27  ;;  %v2817_v42 = vsel %vm408_vm0, %v455_v21, %v457_v26  ;;  %v462_v45 = vrot.slane %v2807_v35, 1  ;;  %v2822_v50 = vsel %vm408_vm0, %v454_v29, %v455_v21  ;;  %v459_v51 = vrot.slane %v2810_v37, 1  ;;  %v2826_v53 = vld [vmem:[%s2601_s30 + $0x110] sm:$0xff]  ;;  %v2829_v58 = vld [vmem:[%s2601_s30 + $0x118] sm:$0x3] }
  0x2d   : > { %503 = vrot.lane.b32.xlu1 %v2685_v33, %s2506_s4  ;;  %4264 = vst [vmem:[#allocation17_spill] sm:$0xff] %v2817_v42  ;;  %4265 = vst [vmem:[#allocation18_spill] sm:$0xff] %v2822_v50  ;;  %v465_v6 = vrot.slane %v2826_v53, 1  ;;  %v467_v8 = vrot.slane %v2829_v58, 1  ;;  %v464_v21 = vrot.slane %v2832_v59, 1  ;;  %v2848_v26 = vld [vmem:[%s2601_s30 + $0x128] sm:$0xff] }
  0x2e   : > { %501 = vrot.lane.b32.xlu0 %v2690_v36, %s2506_s4  ;;  %v2839_v61 = vsel %vm408_vm0, %v460_v43, %v462_v45  ;;  %v2844_v13 = vsel %vm408_vm0, %v459_v51, %v460_v43  ;;  %v2851_v29 = vld [vmem:[%s2601_s30 + $0x130] sm:$0x3]  ;;  %v470_v43 = vrot.slane %v2848_v26, 1 }
  0x2f   : > { %4266 = vst [vmem:[#allocation19_spill] sm:$0xff] %v2839_v61  ;;  %4267 = vst [vmem:[#allocation20_spill] sm:$0xff] %v2844_v13  ;;  %v2861_v45 = vsel %vm408_vm0, %v465_v6, %v467_v8  ;;  %v472_v51 = vrot.slane %v2851_v29, 1 }
  0x30   : > { %4268 = vst [vmem:[#allocation21_spill] sm:$0xff] %v2861_v45 }
  0x31   : > { %507 = vrot.lane.b32.xlu1 %v2707_v41, %s2506_s4  ;;  %v2883_v8 = vsel %vm408_vm0, %v470_v43, %v472_v51  ;;  %v2917_v41 = vld [vmem:[%s2601_s30 + $0x178] sm:$0x3] }
  0x32   : > { %505 = vrot.lane.b32.xlu0 %v2712_v44, %s2506_s4  ;;  %4270 = vst [vmem:[#allocation23_spill] sm:$0xff] %v2883_v8 }
  0x35   : > { %511 = vrot.lane.b32.xlu1 %v2729_v49, %s2506_s4 }
  0x36   : > { %509 = vrot.lane.b32.xlu0 %v2734_v52, %s2506_s4  ;;  %v2914_v52 = vld [vmem:[%s2601_s30 + $0x170] sm:$0xff] }
  0x39   : > { %515 = vrot.lane.b32.xlu1 %v2751_v57, %s2506_s4  ;;  %v2892_v57 = vld [vmem:[%s2601_s30 + $0x158] sm:$0xff] }
  0x3a   : > { %513 = vrot.lane.b32.xlu0 %v2756_v60, %s2506_s4 }
  0x3d   : > { %519 = vrot.lane.b32.xlu1 %v2773_v4, %s2506_s4 }
  0x3e   : > { %517 = vrot.lane.b32.xlu0 %v2778_v9, %s2506_s4 }
  0x41   : > { %523 = vrot.lane.b32.xlu1 %v2795_v20, %s2506_s4 }
  0x42   : > { %521 = vrot.lane.b32.xlu0 %v2800_v27, %s2506_s4  ;;  %v2870_v27 = vld [vmem:[%s2601_s30 + $0x140] sm:$0xff] }
  0x45   : > { %527 = vrot.lane.b32.xlu1 %v2817_v42, %s2506_s4  ;;  %v2854_v42 = vld [vmem:[%s2601_s30 + $0x120] sm:$0xff] }
  0x46   : > { %525 = vrot.lane.b32.xlu0 %v2822_v50, %s2506_s4  ;;  %v2866_v50 = vsel %vm408_vm0, %v464_v21, %v465_v6  ;;  %v469_v20 = vrot.slane %v2854_v42, 1  ;;  %v475_v6 = vrot.slane %v2870_v27, 1 }
  0x47   : > { %4269 = vst [vmem:[#allocation22_spill] sm:$0xff] %v2866_v50 }
  0x48   : > { %v2888_v4 = vsel %vm408_vm0, %v469_v20, %v470_v43  ;;  %v480_v20 = vrot.slane %v2892_v57, 1 }
  0x49   : > { %531 = vrot.lane.b32.xlu1 %v2839_v61, %s2506_s4  ;;  %v2873_v61 = vld [vmem:[%s2601_s30 + $0x148] sm:$0x3]  ;;  %4271 = vst [vmem:[#allocation24_spill] sm:$0xff] %v2888_v4 }
  0x4a   : > { %529 = vrot.lane.b32.xlu0 %v2844_v13, %s2506_s4  ;;  %v2876_v13 = vld [vmem:[%s2601_s30 + $0x138] sm:$0xff]  ;;  %v477_v21 = vrot.slane %v2873_v61, 1 }
  0x4b   : > { %v474_v9 = vrot.slane %v2876_v13, 1 }
  0x4c   : > { %v2905_v51 = vsel %vm408_vm0, %v475_v6, %v477_v21 }
  0x4d   : > { %535 = vrot.lane.b32.xlu1 %v2861_v45, %s2506_s4  ;;  %v2895_v45 = vld [vmem:[%s2601_s30 + $0x160] sm:$0x3]  ;;  %4272 = vst [vmem:[#allocation25_spill] sm:$0xff] %v2905_v51  ;;  %v2910_v60 = vsel %vm408_vm0, %v474_v9, %v475_v6  ;;  %v485_v9 = vrot.slane %v2914_v52, 1  ;;  %v487_v6 = vrot.slane %v2917_v41, 1 }
  0x4e   : > { %533 = vrot.lane.b32.xlu0 %v2866_v50, %s2506_s4  ;;  %v2898_v50 = vld [vmem:[%s2601_s30 + $0x150] sm:$0xff]  ;;  %v482_v43 = vrot.slane %v2895_v45, 1  ;;  %4273 = vst [vmem:[#allocation26_spill] sm:$0xff] %v2910_v60 }
  0x4f   : > { %v479_v49 = vrot.slane %v2898_v50, 1 }
  0x50   : > { %v2927_v21 = vsel %vm408_vm0, %v480_v20, %v482_v43  ;;  %v587_v43 = vrot.slane %v2615_v5, 2  ;;  %v594_v5 = vrot.slane %v2619_v7, 2  ;;  %v596_v7 = vrot.slane %v2637_v15, 2 }
  0x51   : > { %539 = vrot.lane.b32.xlu1 %v2883_v8, %s2506_s4  ;;  %v2920_v8 = vld [vmem:[%s2601_s30 + $0x168] sm:$0xff]  ;;  %4274 = vst [vmem:[#allocation27_spill] sm:$0xff] %v2927_v21 }
  0x52   : > { %537 = vrot.lane.b32.xlu0 %v2888_v4, %s2506_s4  ;;  %v2932_v4 = vsel %vm408_vm0, %v479_v49, %v480_v20  ;;  %v484_v44 = vrot.slane %v2920_v8, 1  ;;  %v586_v49 = vrot.slane %v2610_v2, 2  ;;  %v629_v2 = vrot.slane %v2763_v63, 2 }
  0x53   : > { %4275 = vst [vmem:[#allocation28_spill] sm:$0xff] %v2932_v4 }
  0x54   : > { %v2945_v33 = vsel %vm408_vm0, %v484_v44, %v485_v9  ;;  %v591_v44 = vrot.slane %v2604_v0, 2 }
  0x55   : > { %543 = vrot.lane.b32.xlu1 %v2905_v51, %s2506_s4  ;;  %v2940_v51 = vsel %vm408_vm0, %v485_v9, %v487_v6  ;;  %4277 = vst [vmem:[#allocation30_spill] sm:$0xff] %v2945_v33  ;;  %v592_v6 = vrot.slane %v2607_v1, 2 }
  0x56   : > { %541 = vrot.lane.b32.xlu0 %v2910_v60, %s2506_s4  ;;  %4276 = vst [vmem:[#allocation29_spill] sm:$0xff] %v2940_v51  ;;  %v589_v60 = vrot.slane %v2624_v10, 2  ;;  %v588_v10 = vsel %vm585_vm1, %v586_v49, %v587_v43  ;;  %v602_v49 = vrot.slane %v2651_v22, 2 }
  0x57   : > { %v2960_v9 = vsel %vm585_vm1, %v592_v6, %v594_v5 }
  0x58   : > { %v590_v20 = vsel %vm585_vm1, %v587_v43, %v589_v60  ;;  %v599_v60 = vrot.slane %v2634_v14, 2 }
  0x59   : > { %547 = vrot.lane.b32.xlu1 %v2927_v21, %s2506_s4  ;;  %v619_v21 = vrot.slane %v2719_v47, 2 }
  0x5a   : > { %545 = vrot.lane.b32.xlu0 %v2932_v4, %s2506_s4  ;;  %v624_v4 = vrot.slane %v2741_v55, 2 }
  0x5d   : > { %551 = vrot.lane.b32.xlu1 %v2940_v51, %s2506_s4  ;;  %v597_v51 = vrot.slane %v2627_v11, 2 }
  0x5e   : > { %549 = vrot.lane.b32.xlu0 %v2945_v33, %s2506_s4  ;;  %v2965_v33 = vsel %vm585_vm1, %v591_v44, %v592_v6  ;;  %v601_v6 = vrot.slane %v2657_v24, 2  ;;  %v609_v44 = vrot.slane %v2675_v31, 2 }
  0x5f   : > { %v2973_v43 = vsel %vm585_vm1, %v597_v51, %v599_v60  ;;  %v2978_v14 = vsel %vm585_vm1, %v596_v7, %v597_v51  ;;  %v606_v51 = vrot.slane %v2678_v32, 2  ;;  %v612_v7 = vrot.slane %v2694_v38, 2 }
  0x61   : > { %668 = vrot.lane.b32.xlu1 %v590_v20, %s2507_s5  ;;  %v604_v20 = vrot.slane %v2654_v23, 2  ;;  %v2991_v23 = vsel %vm585_vm1, %v601_v6, %v602_v49 }
  0x62   : > { %666 = vrot.lane.b32.xlu0 %v588_v10, %s2507_s5  ;;  %v607_v10 = vrot.slane %v2672_v30, 2 }
  0x63   : > { %v2986_v5 = vsel %vm585_vm1, %v602_v49, %v604_v20  ;;  %v614_v20 = vrot.slane %v2697_v39, 2  ;;  %v611_v49 = vrot.slane %v2700_v40, 2 }
  0x64   : > { %v2999_v60 = vsel %vm585_vm1, %v607_v10, %v609_v44  ;;  %v3004_v31 = vsel %vm585_vm1, %v606_v51, %v607_v10  ;;  %v617_v44 = vrot.slane %v2716_v46, 2  ;;  %v616_v10 = vrot.slane %v2722_v48, 2 }
  0x65   : > { %672 = vrot.lane.b32.xlu1 %v2960_v9, %s2507_s5  ;;  %v3012_v6 = vsel %vm585_vm1, %v612_v7, %v614_v20  ;;  %v3017_v39 = vsel %vm585_vm1, %v611_v49, %v612_v7  ;;  %v622_v20 = vrot.slane %v2738_v54, 2  ;;  %v621_v7 = vrot.slane %v2744_v56, 2 }
  0x66   : > { %670 = vrot.lane.b32.xlu0 %v2965_v33, %s2507_s5  ;;  %v3025_v51 = vsel %vm585_vm1, %v617_v44, %v619_v21  ;;  %v3030_v47 = vsel %vm585_vm1, %v616_v10, %v617_v44  ;;  %v627_v21 = vrot.slane %v2760_v62, 2  ;;  %v626_v44 = vrot.slane %v2766_v3, 2 }
  0x67   : > { %4278 = vst [vmem:[#allocation31_spill] sm:$0xff] %v3025_v51  ;;  %v3038_v49 = vsel %vm585_vm1, %v622_v20, %v624_v4  ;;  %v3043_v55 = vsel %vm585_vm1, %v621_v7, %v622_v20  ;;  %v632_v4 = vrot.slane %v2782_v16, 2  ;;  %v631_v20 = vrot.slane %v2788_v19, 2 }
  0x68   : > { %4279 = vst [vmem:[#allocation32_spill] sm:$0xff] %v3038_v49  ;;  %4280 = vst [vmem:[#allocation33_spill] sm:$0xff] %v3043_v55  ;;  %v3051_v10 = vsel %vm585_vm1, %v627_v21, %v629_v2  ;;  %v3056_v63 = vsel %vm585_vm1, %v626_v44, %v627_v21  ;;  %v637_v2 = vrot.slane %v2804_v34, 2  ;;  %v636_v21 = vrot.slane %v2810_v37, 2 }
  0x69   : > { %676 = vrot.lane.b32.xlu1 %v2973_v43, %s2507_s5  ;;  %4281 = vst [vmem:[#allocation34_spill] sm:$0xff] %v3051_v10  ;;  %4282 = vst [vmem:[#allocation35_spill] sm:$0xff] %v3056_v63 }
  0x6a   : > { %674 = vrot.lane.b32.xlu0 %v2978_v14, %s2507_s5 }
  0x6d   : > { %680 = vrot.lane.b32.xlu1 %v2986_v5, %s2507_s5 }
  0x6e   : > { %678 = vrot.lane.b32.xlu0 %v2991_v23, %s2507_s5 }
  0x71   : > { %684 = vrot.lane.b32.xlu1 %v2999_v60, %s2507_s5 }
  0x72   : > { %682 = vrot.lane.b32.xlu0 %v3004_v31, %s2507_s5 }
  0x75   : > { %688 = vrot.lane.b32.xlu1 %v3012_v6, %s2507_s5 }
  0x76   : > { %686 = vrot.lane.b32.xlu0 %v3017_v39, %s2507_s5 }
  0x79   : > { %692 = vrot.lane.b32.xlu1 %v3025_v51, %s2507_s5  ;;  %v634_v51 = vrot.slane %v2785_v18, 2  ;;  %v3069_v18 = vsel %vm585_vm1, %v631_v20, %v632_v4 }
  0x7a   : > { %690 = vrot.lane.b32.xlu0 %v3030_v47, %s2507_s5  ;;  %4284 = vst [vmem:[#allocation37_spill] sm:$0xff] %v3069_v18 }
  0x7b   : > { %v3064_v7 = vsel %vm585_vm1, %v632_v4, %v634_v51  ;;  %v642_v51 = vrot.slane %v2826_v53, 2  ;;  %v641_v4 = vrot.slane %v2832_v59, 2 }
  0x7c   : > { %4283 = vst [vmem:[#allocation36_spill] sm:$0xff] %v3064_v7 }
  0x7d   : > { %696 = vrot.lane.b32.xlu1 %v3038_v49, %s2507_s5  ;;  %v639_v49 = vrot.slane %v2807_v35, 2  ;;  %v3082_v35 = vsel %vm585_vm1, %v636_v21, %v637_v2 }
  0x7e   : > { %694 = vrot.lane.b32.xlu0 %v3043_v55, %s2507_s5  ;;  %4286 = vst [vmem:[#allocation39_spill] sm:$0xff] %v3082_v35 }
  0x7f   : > { %v3077_v44 = vsel %vm585_vm1, %v637_v2, %v639_v49  ;;  %v647_v49 = vrot.slane %v2848_v26, 2  ;;  %v646_v2 = vrot.slane %v2854_v42, 2 }
  0x80   : > { %4285 = vst [vmem:[#allocation38_spill] sm:$0xff] %v3077_v44 }
  0x81   : > { %700 = vrot.lane.b32.xlu1 %v3051_v10, %s2507_s5  ;;  %v644_v10 = vrot.slane %v2829_v58, 2  ;;  %v3095_v58 = vsel %vm585_vm1, %v641_v4, %v642_v51 }
  0x82   : > { %698 = vrot.lane.b32.xlu0 %v3056_v63, %s2507_s5  ;;  %4288 = vst [vmem:[#allocation41_spill] sm:$0xff] %v3095_v58 }
  0x83   : > { %v3090_v20 = vsel %vm585_vm1, %v642_v51, %v644_v10  ;;  %v652_v10 = vrot.slane %v2870_v27, 2  ;;  %v651_v51 = vrot.slane %v2876_v13, 2 }
  0x84   : > { %4287 = vst [vmem:[#allocation40_spill] sm:$0xff] %v3090_v20 }
  0x85   : > { %704 = vrot.lane.b32.xlu1 %v3064_v7, %s2507_s5  ;;  %v649_v7 = vrot.slane %v2851_v29, 2  ;;  %v3108_v29 = vsel %vm585_vm1, %v646_v2, %v647_v49 }
  0x86   : > { %702 = vrot.lane.b32.xlu0 %v3069_v18, %s2507_s5  ;;  %4290 = vst [vmem:[#allocation43_spill] sm:$0xff] %v3108_v29  ;;  %v1629_v18 = vld [vmem:[%s4159_s2 + $0x8] sm:$0xff] }
  0x87   : > { %v3103_v21 = vsel %vm585_vm1, %v647_v49, %v649_v7  ;;  %v657_v7 = vrot.slane %v2892_v57, 2  ;;  %v656_v49 = vrot.slane %v2898_v50, 2 }
  0x88   : > { %4289 = vst [vmem:[#allocation42_spill] sm:$0xff] %v3103_v21 }
  0x89   : > { %708 = vrot.lane.b32.xlu1 %v3077_v44, %s2507_s5  ;;  %v654_v44 = vrot.slane %v2873_v61, 2  ;;  %v3123_v61 = vsel %vm585_vm1, %v651_v51, %v652_v10  ;;  %v661_v51 = vrot.slane %v2920_v8, 2 }
  0x8a   : > { %706 = vrot.lane.b32.xlu0 %v3082_v35, %s2507_s5  ;;  %4293 = vst [vmem:[#allocation46_spill] sm:$0xff] %v3123_v61 }
  0x8b   : > { %v3116_v4 = vsel %vm585_vm1, %v652_v10, %v654_v44  ;;  %v3140_v10 = vsel %vm585_vm1, %v656_v49, %v657_v7 }
  0x8c   : > { %4291 = vst [vmem:[#allocation44_spill] sm:$0xff] %v3116_v4  ;;  %4297 = vst [vmem:[#allocation50_spill] sm:$0xff] %v3140_v10 }
  0x8d   : > { %712 = vrot.lane.b32.xlu1 %v3090_v20, %s2507_s5  ;;  %v659_v20 = vrot.slane %v2895_v45, 2  ;;  %v662_v45 = vrot.slane %v2914_v52, 2 }
  0x8e   : > { %710 = vrot.lane.b32.xlu0 %v3095_v58, %s2507_s5 }
  0x8f   : > { %v3133_v44 = vsel %vm585_vm1, %v657_v7, %v659_v20 }
  0x90   : > { %4295 = vst [vmem:[#allocation48_spill] sm:$0xff] %v3133_v44 }
  0x91   : > { %716 = vrot.lane.b32.xlu1 %v3103_v21, %s2507_s5  ;;  %v664_v21 = vrot.slane %v2917_v41, 2  ;;  %v3155_v41 = vsel %vm585_vm1, %v661_v51, %v662_v45 }
  0x92   : > { %714 = vrot.lane.b32.xlu0 %v3108_v29, %s2507_s5  ;;  %4301 = vst [vmem:[#allocation54_spill] sm:$0xff] %v3155_v41 }
  0x93   : > { %v3120_v58 = vpop.permute.xlu1 %493  ;;  %v3150_v20 = vsel %vm585_vm1, %v662_v45, %v664_v21 }
  0x94   : > { %4292 = vst [vmem:[#allocation45_spill] sm:$0xff] %v3120_v58  ;;  %v3126_v2 = vpop.permute.xlu0 %489  ;;  %4299 = vst [vmem:[#allocation52_spill] sm:$0xff] %v3150_v20 }
  0x95   : > { %4294 = vst [vmem:[#allocation47_spill] sm:$0xff] %v3126_v2  ;;  %720 = vrot.lane.b32.xlu1 %v3116_v4, %s2507_s5 }
  0x96   : > { %718 = vrot.lane.b32.xlu0 %v3123_v61, %s2507_s5 }
  0x97   : > { %v3137_v29 = vpop.permute.xlu1 %495 }
  0x98   : > { %4296 = vst [vmem:[#allocation49_spill] sm:$0xff] %v3137_v29  ;;  %v3143_v35 = vpop.permute.xlu0 %491 }
  0x99   : > { %4298 = vst [vmem:[#allocation51_spill] sm:$0xff] %v3143_v35  ;;  %724 = vrot.lane.b32.xlu1 %v3133_v44, %s2507_s5  ;;  %v1631_v35 = vld [vmem:[%s4159_s2 + $0x18] sm:$0xff] }
  0x9a   : > { %722 = vrot.lane.b32.xlu0 %v3140_v10, %s2507_s5 }
  0x9b   : > { %v3152_v4 = vpop.permute.xlu1 %499 }
  0x9c   : > { %4300 = vst [vmem:[#allocation53_spill] sm:$0xff] %v3152_v4  ;;  %v3157_v7 = vpop.permute.xlu0 %497 }
  0x9d   : > { %4302 = vst [vmem:[#allocation55_spill] sm:$0xff] %v3157_v7  ;;  %728 = vrot.lane.b32.xlu1 %v3150_v20, %s2507_s5  ;;  %v1628_v7 = vld [vmem:[%s4159_s2] sm:$0xff] }
  0x9e   : > { %726 = vrot.lane.b32.xlu0 %v3155_v41, %s2507_s5  ;;  %v2326_v29 = vpack.c.bf16 %v1629_v18, %v1628_v7 }
  0x9f   : > { %v3163_v49 = vpop.permute.xlu1 %503 }
  0xa0   : > { %4303 = vst [vmem:[#allocation56_spill] sm:$0xff] %v3163_v49  ;;  %v3165_v44 = vpop.permute.xlu0 %501  ;;  %2327 = vmatprep.subr.bf16.mxu0 %v2326_v29  ;;  %2334 = vmatprep.subr.bf16.mxu1 %v2326_v29 }
  0xa1   : > { %4304 = vst [vmem:[#allocation57_spill] sm:$0xff] %v3165_v44  ;;  %766 = vrot.lane.b32.xlu1 %v2607_v1, %s2508_s6  ;;  %2329 = vmatpush3.bf16.msra.mxu0 %v2326_v29 }
  0xa2   : > { %764 = vrot.lane.b32.xlu0 %v2604_v0, %s2508_s6  ;;  %2337 = vmatpush3.bf16.msra.mxu1 %v2326_v29 }
  0xa3   : > { %v3171_v21 = vpop.permute.xlu1 %507 }
  0xa4   : > { %v3173_v45 = vpop.permute.xlu0 %505 }
  0xa5   : > { %770 = vrot.lane.b32.xlu1 %v2627_v11, %s2508_s6 }
  0xa6   : > { %768 = vrot.lane.b32.xlu0 %v2637_v15, %s2508_s6 }
  0xa7   : > { %v3179_v51 = vpop.permute.xlu1 %511 }
  0xa8   : > { %v3181_v20 = vpop.permute.xlu0 %509 }
  0xa9   : > { %774 = vrot.lane.b32.xlu1 %v2651_v22, %s2508_s6 }
  0xaa   : > { %772 = vrot.lane.b32.xlu0 %v2657_v24, %s2508_s6 }
  0xab   : > { %v3187_v0 = vpop.permute.xlu1 %515 }
  0xac   : > { %v3189_v1 = vpop.permute.xlu0 %513 }
  0xad   : > { %778 = vrot.lane.b32.xlu1 %v2672_v30, %s2508_s6 }
  0xae   : > { %776 = vrot.lane.b32.xlu0 %v2678_v32, %s2508_s6 }
  0xaf   : > { %v3195_v41 = vpop.permute.xlu1 %519 }
  0xb0   : > { %v3197_v10 = vpop.permute.xlu0 %517 }
  0xb1   : > { %782 = vrot.lane.b32.xlu1 %v2694_v38, %s2508_s6 }
  0xb2   : > { %780 = vrot.lane.b32.xlu0 %v2700_v40, %s2508_s6 }
  0xb3   : > { %v3203_v61 = vpop.permute.xlu1 %523 }
  0xb4   : > { %v3205_v49 = vpop.permute.xlu0 %521 }
  0xb5   : > { %786 = vrot.lane.b32.xlu1 %v2716_v46, %s2508_s6 }
  0xb6   : > { %784 = vrot.lane.b32.xlu0 %v2722_v48, %s2508_s6 }
  0xb7   : > { %v3211_v44 = vpop.permute.xlu1 %527 }
  0xb8   : > { %v3213_v4 = vpop.permute.xlu0 %525 }
  0xb9   : > { %866 = vrot.lane.b32.xlu1 %v2630_v12, %s2509_s7  ;;  %v1630_v12 = vld [vmem:[%s4159_s2 + $0x10] sm:$0xff] }
  0xba   : > { %788 = vrot.lane.b32.xlu0 %v2744_v56, %s2508_s6  ;;  %v2330_v18 = vpack.c.bf16 %v1631_v35, %v1630_v12 }
  0xbb   : > { %v3225_v58 = vpop.permute.xlu1 %531 }
  0xbc   : > { %v3227_v63 = vpop.permute.xlu0 %529  ;;  %2331 = vmatprep.subr.bf16.mxu0 %v2330_v18  ;;  %2335 = vmatprep.subr.bf16.mxu1 %v2330_v18 }
  0xbd   : > { %967 = vrot.lane.b32.xlu1 %v2965_v33, %s2510_s18  ;;  %2333 = vmatpush3.bf16.msra.mxu0 %v2330_v18 }
  0xbe   : > { %868 = vrot.lane.b32.xlu0 %v2644_v17, %s2509_s7  ;;  %v1632_v17 = vld [vmem:[%s4159_s2 + $0x20] sm:$0xf]  ;;  %2338 = vmatpush3.bf16.msra.mxu1 %v2330_v18 }
  0xbf   : > { %v3239_v7 = vpop.permute.xlu1 %535  ;;  %2276 = vmatprep.subr.msk.mxu0 %vm1730_vm2, %v1632_v17  ;;  %2336 = vmatprep.subr.msk.mxu1 %vm1730_vm2, %v1632_v17 }
  0xc0   : > { %v3241_v2 = vpop.permute.xlu0 %533 }
  0xc1   : > { %1065 = vrot.lane.b32.xlu1 %v2637_v15, %s2511_s29  ;;  %2277 = vmatpush3.msk.msra.mxu0 %vm1730_vm2, %v1632_v17 }
  0xc2   : > { %969 = vrot.lane.b32.xlu0 %v2960_v9, %s2510_s18  ;;  %2339 = vmatpush3.msk.msra.mxu1 %vm1730_vm2, %v1632_v17 }
  0xc3   : > { %v3250_v33 = vpop.permute.xlu1 %539 }
  0xc4   : > { %v3252_v35 = vpop.permute.xlu0 %537 }
  0xc5   : > { %1167 = vrot.lane.b32.xlu1 %v2668_v28, %s2512_s8 }
  0xc6   : > { %1067 = vrot.lane.b32.xlu0 %v2627_v11, %s2511_s29 }
  0xc7   : > { %v3258_v15 = vpop.permute.xlu1 %543 }
  0xc8   : > { %v3260_v9 = vpop.permute.xlu0 %541 }
  0xc9   : > { %1169 = vrot.lane.b32.xlu1 %v2663_v25, %s2512_s8 }
  0xca   : > { %870 = vrot.lane.b32.xlu0 %v2668_v28, %s2509_s7 }
  0xcb   : > { %v3266_v29 = vpop.permute.xlu1 %547 }
  0xcc   : > { %v3268_v12 = vpop.permute.xlu0 %545 }
  0xcd   : > { %872 = vrot.lane.b32.xlu1 %v2663_v25, %s2509_s7 }
  0xce   : > { %1268 = vrot.lane.b32.xlu0 %v2978_v14, %s2513_s9 }
  0xcf   : > { %v3274_v11 = vpop.permute.xlu1 %551 }
  0xd0   : > { %v3276_v18 = vpop.permute.xlu0 %549 }
  0xd1   : > { %1270 = vrot.lane.b32.xlu1 %v2973_v43, %s2513_s9 }
  0xd2   : > { %971 = vrot.lane.b32.xlu0 %v2978_v14, %s2510_s18 }
  0xd3   : > { %v3282_v28 = vpop.permute.xlu1 %668 }
  0xd4   : > { %4305 = vst [vmem:[#allocation58_spill] sm:$0xff] %v3282_v28  ;;  %v3284_v17 = vpop.permute.xlu0 %666 }
  0xd5   : > { %4306 = vst [vmem:[#allocation59_spill] sm:$0xff] %v3284_v17  ;;  %1069 = vrot.lane.b32.xlu1 %v2657_v24, %s2511_s29  ;;  %v4309_v17 = vld [vmem:[#allocation6_spill] sm:$0xff] }
  0xd6   : > { %973 = vrot.lane.b32.xlu0 %v2973_v43, %s2510_s18 }
  0xd7   : > { %v3290_v25 = vpop.permute.xlu1 %672 }
  0xd8   : > { %v3292_v55 = vpop.permute.xlu0 %670 }
  0xd9   : > { %1171 = vrot.lane.b32.xlu1 %v2690_v36, %s2512_s8 }
  0xda   : > { %1071 = vrot.lane.b32.xlu0 %v2651_v22, %s2511_s29  ;;  %v1374_v22 = vsel %vm1364_vm3, %v2672_v30, %v3171_v21  ;;  %v1376_v21 = vsel %vm1364_vm3, %v2694_v38, %v3179_v51 }
  0xdb   : > { %v3298_v14 = vpop.permute.xlu1 %676 }
  0xdc   : > { %4307 = vst [vmem:[#allocation60_spill] sm:$0xff] %v3298_v14  ;;  %v3300_v28 = vpop.permute.xlu0 %674 }
  0xdd   : > { %4308 = vst [vmem:[#allocation61_spill] sm:$0xff] %v3300_v28  ;;  %1173 = vrot.lane.b32.xlu1 %v4309_v17, %s2512_s8 }
  0xde   : > { %874 = vrot.lane.b32.xlu0 %v2690_v36, %s2509_s7  ;;  %v1373_v36 = vsel %vm1364_vm3, %v2678_v32, %v3173_v45  ;;  %v1375_v45 = vsel %vm1364_vm3, %v2700_v40, %v3181_v20  ;;  %v1377_v20 = vsel %vm1364_vm3, %v2722_v48, %v3189_v1  ;;  %v1379_v1 = vsel %vm1364_vm3, %v2744_v56, %v3197_v10 }
  0xdf   : > { %v3306_v24 = vpop.permute.xlu1 %680  ;;  %v1381_v10 = vsel %vm1364_vm3, %v2766_v3, %v3205_v49  ;;  %v1383_v49 = vsel %vm1364_vm3, %v2788_v19, %v3213_v4  ;;  %v1385_v4 = vsel %vm1364_vm3, %v2810_v37, %v3227_v63  ;;  %v1387_v37 = vsel %vm1364_vm3, %v2832_v59, %v3241_v2 }
  0xe0   : > { %4310 = vst [vmem:[#allocation6_spill] sm:$0xff] %v3306_v24  ;;  %v3308_v43 = vpop.permute.xlu0 %678  ;;  %v1389_v59 = vsel %vm1364_vm3, %v2854_v42, %v3252_v35  ;;  %v1391_v42 = vsel %vm1364_vm3, %v2876_v13, %v3260_v9  ;;  %v1393_v13 = vsel %vm1364_vm3, %v2898_v50, %v3268_v12  ;;  %v1395_v50 = vsel %vm1364_vm3, %v2920_v8, %v3276_v18 }
  0xe1   : > { %4311 = vst [vmem:[#allocation62_spill] sm:$0xff] %v3308_v43  ;;  %876 = vrot.lane.b32.xlu1 %v4309_v17, %s2509_s7 }
  0xe2   : > { %1272 = vrot.lane.b32.xlu0 %v2991_v23, %s2513_s9 }
  0xe3   : > { %v685_v14 = vpop.permute.xlu1 %684 }
  0xe4   : > { %v3321_v24 = vsel %vm1397_vm4, %v1374_v22, %v685_v14  ;;  %v683_v43 = vpop.permute.xlu0 %682 }
  0xe5   : > { %v3324_v17 = vsel %vm1397_vm4, %v1373_v36, %v683_v43  ;;  %1274 = vrot.lane.b32.xlu1 %v2986_v5, %s2513_s9 }
  0xe6   : > { %975 = vrot.lane.b32.xlu0 %v2991_v23, %s2510_s18  ;;  %v1378_v23 = vsel %vm1364_vm3, %v2716_v46, %v3187_v0 }
  0xe7   : > { %v689_v28 = vpop.permute.xlu1 %688 }
  0xe8   : > { %v3337_v14 = vsel %vm1397_vm4, %v1376_v21, %v689_v28  ;;  %v687_v43 = vpop.permute.xlu0 %686 }
  0xe9   : > { %v3340_v22 = vsel %vm1397_vm4, %v1375_v45, %v687_v43  ;;  %1073 = vrot.lane.b32.xlu1 %v2678_v32, %s2511_s29  ;;  %v4312_v32 = vld [vmem:[#allocation8_spill] sm:$0xff] }
  0xea   : > { %977 = vrot.lane.b32.xlu0 %v2986_v5, %s2510_s18  ;;  %v1380_v5 = vsel %vm1364_vm3, %v2738_v54, %v3195_v41 }
  0xeb   : > { %v693_v51 = vpop.permute.xlu1 %692 }
  0xec   : > { %v3353_v28 = vsel %vm1397_vm4, %v1378_v23, %v693_v51  ;;  %v691_v36 = vpop.permute.xlu0 %690  ;;  %v4313_v51 = vld [vmem:[#allocation7_spill] sm:$0xff] }
  0xed   : > { %v3356_v21 = vsel %vm1397_vm4, %v1377_v20, %v691_v36  ;;  %1175 = vrot.lane.b32.xlu1 %v4312_v32, %s2512_s8 }
  0xee   : > { %1075 = vrot.lane.b32.xlu0 %v2672_v30, %s2511_s29  ;;  %v1382_v30 = vsel %vm1364_vm3, %v2760_v62, %v3203_v61  ;;  %v1384_v61 = vsel %vm1364_vm3, %v2782_v16, %v3211_v44  ;;  %v1386_v44 = vsel %vm1364_vm3, %v2804_v34, %v3225_v58  ;;  %v1388_v34 = vsel %vm1364_vm3, %v2826_v53, %v3239_v7 }
  0xef   : > { %v697_v0 = vpop.permute.xlu1 %696  ;;  %v1390_v53 = vsel %vm1364_vm3, %v2848_v26, %v3250_v33 }
  0xf0   : > { %v3369_v45 = vsel %vm1397_vm4, %v1380_v5, %v697_v0  ;;  %v695_v43 = vpop.permute.xlu0 %694 }
  0xf1   : > { %v3372_v23 = vsel %vm1397_vm4, %v1379_v1, %v695_v43  ;;  %1177 = vrot.lane.b32.xlu1 %v4313_v51, %s2512_s8 }
  0xf2   : > { %878 = vrot.lane.b32.xlu0 %v4312_v32, %s2509_s7 }
  0xf3   : > { %v701_v41 = vpop.permute.xlu1 %700 }
  0xf4   : > { %v3385_v20 = vsel %vm1397_vm4, %v1382_v30, %v701_v41  ;;  %v699_v36 = vpop.permute.xlu0 %698 }
  0xf5   : > { %v3388_v5 = vsel %vm1397_vm4, %v1381_v10, %v699_v36  ;;  %880 = vrot.lane.b32.xlu1 %v4313_v51, %s2509_s7 }
  0xf6   : > { %1276 = vrot.lane.b32.xlu0 %v3004_v31, %s2513_s9 }
  0xf7   : > { %v705_v32 = vpop.permute.xlu1 %704 }
  0xf8   : > { %v3401_v0 = vsel %vm1397_vm4, %v1384_v61, %v705_v32  ;;  %v703_v1 = vpop.permute.xlu0 %702  ;;  %v4315_v32 = vld [vmem:[#allocation9_spill] sm:$0xff] }
  0xf9   : > { %v3404_v43 = vsel %vm1397_vm4, %v1383_v49, %v703_v1  ;;  %1278 = vrot.lane.b32.xlu1 %v2999_v60, %s2513_s9 }
  0xfa   : > { %979 = vrot.lane.b32.xlu0 %v3004_v31, %s2510_s18 }
  0xfb   : > { %v709_v51 = vpop.permute.xlu1 %708 }
  0xfc   : > { %v3417_v30 = vsel %vm1397_vm4, %v1386_v44, %v709_v51  ;;  %v707_v41 = vpop.permute.xlu0 %706 }
  0xfd   : > { %v3420_v10 = vsel %vm1397_vm4, %v1385_v4, %v707_v41  ;;  %1077 = vrot.lane.b32.xlu1 %v2700_v40, %s2511_s29  ;;  %v4314_v40 = vld [vmem:[#allocation10_spill] sm:$0xff]  ;;  %v4317_v41 = vld [vmem:[#allocation11_spill] sm:$0xff] }
  0xfe   : > { %981 = vrot.lane.b32.xlu0 %v2999_v60, %s2510_s18 }
  0xff   : > { %v713_v31 = vpop.permute.xlu1 %712 }
 0x100   : > { %v3433_v63 = vsel %vm1397_vm4, %v1388_v34, %v713_v31  ;;  %v711_v58 = vpop.permute.xlu0 %710  ;;  %v4318_v31 = vld [vmem:[#allocation31_spill] sm:$0xff] }
 0x101   : > { %v3436_v36 = vsel %vm1397_vm4, %v1387_v37, %v711_v58  ;;  %1179 = vrot.lane.b32.xlu1 %v4314_v40, %s2512_s8 }
 0x102   : > { %1079 = vrot.lane.b32.xlu0 %v2694_v38, %s2511_s29  ;;  %v1392_v38 = vsel %vm1364_vm3, %v2870_v27, %v3258_v15  ;;  %v1394_v27 = vsel %vm1364_vm3, %v2892_v57, %v3266_v29  ;;  %v1396_v57 = vsel %vm1364_vm3, %v2914_v52, %v3274_v11  ;;  %v4316_v11 = vld [vmem:[#allocation12_spill] sm:$0xff] }
 0x103   : > { %v717_v60 = vpop.permute.xlu1 %716 }
 0x104   : > { %v3449_v2 = vsel %vm1397_vm4, %v1390_v53, %v717_v60  ;;  %v715_v7 = vpop.permute.xlu0 %714  ;;  %v4319_v60 = vld [vmem:[#allocation14_spill] sm:$0xff] }
 0x105   : > { %v3452_v61 = vsel %vm1397_vm4, %v1389_v59, %v715_v7  ;;  %1181 = vrot.lane.b32.xlu1 %v4315_v32, %s2512_s8 }
 0x106   : > { %882 = vrot.lane.b32.xlu0 %v4314_v40, %s2509_s7 }
 0x107   : > { %v721_v26 = vpop.permute.xlu1 %720 }
 0x108   : > { %v3465_v33 = vsel %vm1397_vm4, %v1392_v38, %v721_v26  ;;  %v719_v35 = vpop.permute.xlu0 %718  ;;  %v4321_v38 = vld [vmem:[#allocation13_spill] sm:$0xff] }
 0x109   : > { %v3468_v49 = vsel %vm1397_vm4, %v1391_v42, %v719_v35  ;;  %884 = vrot.lane.b32.xlu1 %v4315_v32, %s2509_s7  ;;  %v4320_v32 = vld [vmem:[#allocation33_spill] sm:$0xff] }
 0x10a   : > { %1280 = vrot.lane.b32.xlu0 %v3017_v39, %s2513_s9 }
 0x10b   : > { %v725_v15 = vpop.permute.xlu1 %724 }
 0x10c   : > { %v3481_v9 = vsel %vm1397_vm4, %v1394_v27, %v725_v15  ;;  %v723_v1 = vpop.permute.xlu0 %722  ;;  %v4323_v15 = vld [vmem:[#allocation47_spill] sm:$0xff] }
 0x10d   : > { %v3484_v44 = vsel %vm1397_vm4, %v1393_v13, %v723_v1  ;;  %1282 = vrot.lane.b32.xlu1 %v3012_v6, %s2513_s9  ;;  %v4324_v13 = vld [vmem:[#allocation5_spill] sm:$0xff] }
 0x10e   : > { %983 = vrot.lane.b32.xlu0 %v3017_v39, %s2510_s18  ;;  %v1365_v1 = vsel %vm1364_vm3, %v4324_v13, %v4323_v15 }
 0x10f   : > { %v729_v29 = vpop.permute.xlu1 %728 }
 0x110   : > { %v3497_v12 = vsel %vm1397_vm4, %v1396_v57, %v729_v29  ;;  %v727_v51 = vpop.permute.xlu0 %726  ;;  %v4325_v57 = vld [vmem:[#allocation59_spill] sm:$0xff] }
 0x111   : > { %v3500_v4 = vsel %vm1397_vm4, %v1395_v50, %v727_v51  ;;  %1081 = vrot.lane.b32.xlu1 %v2722_v48, %s2511_s29  ;;  %v1398_v29 = vsel %vm1397_vm4, %v1365_v1, %v4325_v57 }
 0x112   : > { %985 = vrot.lane.b32.xlu0 %v3012_v6, %s2510_s18 }
 0x113   : > { %v767_v39 = vpop.permute.xlu1 %766 }
 0x114   : > { %v765_v52 = vpop.permute.xlu0 %764 }
 0x115   : > { %1183 = vrot.lane.b32.xlu1 %v4316_v11, %s2512_s8  ;;  %v1431_v51 = vsel %vm1430_vm5, %v1398_v29, %v765_v52 }
 0x116   : > { %1083 = vrot.lane.b32.xlu0 %v2716_v46, %s2511_s29 }
 0x117   : > { %v3510_v8 = vpop.permute.xlu1 %770 }
 0x118   : > { %v3512_v18 = vpop.permute.xlu0 %768 }
 0x119   : > { %1185 = vrot.lane.b32.xlu1 %v4317_v41, %s2512_s8 }
 0x11a   : > { %886 = vrot.lane.b32.xlu0 %v4316_v11, %s2509_s7 }
 0x11b   : > { %v3518_v48 = vpop.permute.xlu1 %774 }
 0x11c   : > { %v3520_v6 = vpop.permute.xlu0 %772 }
 0x11d   : > { %888 = vrot.lane.b32.xlu1 %v4317_v41, %s2509_s7  ;;  %v2407_v41 = vld [vmem:[%s2601_s30 + $0x8] sm:$0xff] }
 0x11e   : > { %1284 = vrot.lane.b32.xlu0 %v3030_v47, %s2513_s9 }
 0x11f   : > { %v3526_v46 = vpop.permute.xlu1 %778 }
 0x120   : > { %v3528_v34 = vpop.permute.xlu0 %776 }
 0x121   : > { %1286 = vrot.lane.b32.xlu1 %v4318_v31, %s2513_s9 }
 0x122   : > { %987 = vrot.lane.b32.xlu0 %v3030_v47, %s2510_s18 }
 0x123   : > { %v3534_v37 = vpop.permute.xlu1 %782 }
 0x124   : > { %v3536_v58 = vpop.permute.xlu0 %780 }
 0x125   : > { %1085 = vrot.lane.b32.xlu1 %v2744_v56, %s2511_s29 }
 0x126   : > { %989 = vrot.lane.b32.xlu0 %v4318_v31, %s2510_s18  ;;  %v4326_v31 = vld [vmem:[#allocation51_spill] sm:$0xff] }
 0x127   : > { %v3542_v40 = vpop.permute.xlu1 %786 }
 0x128   : > { %v3544_v53 = vpop.permute.xlu0 %784 }
 0x129   : > { %1187 = vrot.lane.b32.xlu1 %v4319_v60, %s2512_s8 }
 0x12a   : > { %1087 = vrot.lane.b32.xlu0 %v2738_v54, %s2511_s29 }
 0x12b   : > { %v867_v47 = vpop.permute.xlu1 %866 }
 0x12c   : > { %v3550_v59 = vpop.permute.xlu0 %788 }
 0x12d   : > { %890 = vrot.lane.b32.xlu1 %v4319_v60, %s2509_s7  ;;  %v1366_v60 = vsel %vm1364_vm3, %v2407_v41, %v4326_v31  ;;  %v4328_v41 = vld [vmem:[#allocation16_spill] sm:$0xff]  ;;  %v4329_v31 = vld [vmem:[#allocation35_spill] sm:$0xff] }
 0x12e   : > { %790 = vrot.lane.b32.xlu0 %v2738_v54, %s2508_s6  ;;  %v4322_v54 = vld [vmem:[#allocation32_spill] sm:$0xff] }
 0x12f   : > { %v968_v56 = vpop.permute.xlu1 %967 }
 0x130   : > { %v869_v7 = vpop.permute.xlu0 %868 }
 0x131   : > { %1288 = vrot.lane.b32.xlu1 %v4320_v32, %s2513_s9 }
 0x132   : > { %1189 = vrot.lane.b32.xlu0 %v4321_v38, %s2512_s8 }
 0x133   : > { %v1066_v26 = vpop.permute.xlu1 %1065 }
 0x134   : > { %v970_v42 = vpop.permute.xlu0 %969 }
 0x135   : > { %991 = vrot.lane.b32.xlu1 %v4320_v32, %s2510_s18  ;;  %v1464_v32 = vsel %vm1463_vm6, %v1431_v51, %v867_v47 }
 0x136   : > { %892 = vrot.lane.b32.xlu0 %v4321_v38, %s2509_s7  ;;  %v4327_v38 = vld [vmem:[#allocation58_spill] sm:$0xff]  ;;  %v1497_v15 = vsel %vm1496_vm7, %v1464_v32, %v968_v56 }
 0x137   : > { %v1168_v35 = vpop.permute.xlu1 %1167  ;;  %v1530_v13 = vsel %vm1529_vm8, %v1497_v15, %v1066_v26 }
 0x138   : > { %v1068_v27 = vpop.permute.xlu0 %1067  ;;  %v1563_v57 = vsel %vm1562_vm9, %v1530_v13, %v1168_v35 }
 0x139   : > { %993 = vrot.lane.b32.xlu1 %v4322_v54, %s2510_s18 }
 0x13a   : > { %1290 = vrot.lane.b32.xlu0 %v4322_v54, %s2513_s9  ;;  %v1399_v54 = vsel %vm1397_vm4, %v1366_v60, %v4327_v38  ;;  %v2408_v38 = vld [vmem:[%s2601_s30 + $0x18] sm:$0xff] }
 0x13b   : > { %v1170_v50 = vpop.permute.xlu1 %1169  ;;  %v1432_v52 = vsel %vm1430_vm5, %v1399_v54, %v767_v39  ;;  %v4331_v54 = vld [vmem:[#allocation45_spill] sm:$0xff] }
 0x13c   : > { %v871_v11 = vpop.permute.xlu0 %870  ;;  %v1465_v47 = vsel %vm1463_vm6, %v1432_v52, %v869_v7  ;;  %v1367_v15 = vsel %vm1364_vm3, %v2408_v38, %v4331_v54 }
 0x13d   : > { %792 = vrot.lane.b32.xlu1 %v2766_v3, %s2508_s6  ;;  %v1498_v51 = vsel %vm1496_vm7, %v1465_v47, %v970_v42 }
 0x13e   : > { %1089 = vrot.lane.b32.xlu0 %v2766_v3, %s2511_s29  ;;  %v1531_v3 = vsel %vm1529_vm8, %v1498_v51, %v1068_v27 }
 0x13f   : > { %v873_v1 = vpop.permute.xlu1 %872  ;;  %v1564_v39 = vsel %vm1562_vm9, %v1531_v3, %v1170_v50  ;;  %v4330_v50 = vld [vmem:[#allocation15_spill] sm:$0xff] }
 0x140   : > { %v1269_v29 = vpop.permute.xlu0 %1268 }
 0x141   : > { %1191 = vrot.lane.b32.xlu1 %v4328_v41, %s2512_s8  ;;  %v1596_v56 = vsel %vm1595_vm10, %v1563_v57, %v1269_v29  ;;  %v2409_v57 = vld [vmem:[%s2601_s30 + $0x20] sm:$0xff] }
 0x142   : > { %1091 = vrot.lane.b32.xlu0 %v2760_v62, %s2511_s29  ;;  %2278 = vmatprep.mubr.msk.f32.mxu0 %vm1633_vm11, %v1596_v56  ;;  %v4332_v29 = vld [vmem:[#allocation49_spill] sm:$0xff]  ;;  %v4333_v56 = vld [vmem:[#allocation34_spill] sm:$0xff] }
 0x143   : > { %v1271_v7 = vpop.permute.xlu1 %1270  ;;  %v1368_v51 = vsel %vm1364_vm3, %v2409_v57, %v4332_v29  ;;  %v4337_v57 = vld [vmem:[#allocation17_spill] sm:$0xff] }
 0x144   : > { %v1597_v26 = vsel %vm1595_vm10, %v1564_v39, %v1271_v7  ;;  %v972_v35 = vpop.permute.xlu0 %971  ;;  %v1401_v3 = vsel %vm1397_vm4, %v1368_v51, %v3290_v25  ;;  %v4338_v29 = vld [vmem:[#allocation61_spill] sm:$0xff] }
 0x145   : > { %894 = vrot.lane.b32.xlu1 %v4328_v41, %s2509_s7  ;;  %2279 = vmatmul.mubr.msk.f32.vlgmr.msra.gmra.mrb[0].mxu0 %vm1633_vm11, %v1597_v26 }
 0x146   : > { %794 = vrot.lane.b32.xlu0 %v2760_v62, %s2508_s6  ;;  %v1400_v62 = vsel %vm1397_vm4, %v1367_v15, %v3292_v55  ;;  %v1434_v55 = vsel %vm1430_vm5, %v1401_v3, %v3510_v8  ;;  %v4335_v15 = vld [vmem:[#allocation37_spill] sm:$0xff]  ;;  %v2411_v3 = vld [vmem:[%s2601_s30 + $0x38] sm:$0xff] }
 0x147   : > { %v1070_v42 = vpop.permute.xlu1 %1069  ;;  %v1433_v13 = vsel %vm1430_vm5, %v1400_v62, %v3512_v18  ;;  %v1467_v26 = vsel %vm1463_vm6, %v1434_v55, %v873_v1  ;;  %v2410_v62 = vld [vmem:[%s2601_s30 + $0x30] sm:$0xff] }
 0x148   : > { %v974_v27 = vpop.permute.xlu0 %973  ;;  %v1466_v41 = vsel %vm1463_vm6, %v1433_v13, %v871_v11 }
 0x149   : > { %1292 = vrot.lane.b32.xlu1 %v4329_v31, %s2513_s9  ;;  %v1499_v39 = vsel %vm1496_vm7, %v1466_v41, %v972_v35 }
 0x14a   : > { %1193 = vrot.lane.b32.xlu0 %v4330_v50, %s2512_s8  ;;  %v1532_v18 = vsel %vm1529_vm8, %v1499_v39, %v1070_v42  ;;  %v4339_v39 = vld [vmem:[#allocation53_spill] sm:$0xff] }
 0x14b   : > { %v1172_v60 = vpop.permute.xlu1 %1171  ;;  %v1370_v55 = vsel %vm1364_vm3, %v2411_v3, %v4339_v39 }
 0x14c   : > { %v1072_v32 = vpop.permute.xlu0 %1071  ;;  %v1565_v11 = vsel %vm1562_vm9, %v1532_v18, %v1172_v60 }
 0x14d   : > { %995 = vrot.lane.b32.xlu1 %v4329_v31, %s2510_s18 }
 0x14e   : > { %896 = vrot.lane.b32.xlu0 %v4330_v50, %s2509_s7  ;;  %v1500_v50 = vsel %vm1496_vm7, %v1467_v26, %v974_v27  ;;  %v4334_v27 = vld [vmem:[#allocation18_spill] sm:$0xff]  ;;  %v4340_v26 = vld [vmem:[#allocation60_spill] sm:$0xff] }
 0x14f   : > { %v1174_v52 = vpop.permute.xlu1 %1173  ;;  %v1533_v35 = vsel %vm1529_vm8, %v1500_v50, %v1072_v32 }
 0x150   : > { %v875_v47 = vpop.permute.xlu0 %874  ;;  %v1566_v8 = vsel %vm1562_vm9, %v1533_v35, %v1174_v52  ;;  %v4336_v52 = vld [vmem:[#allocation55_spill] sm:$0xff] }
 0x151   : > { %997 = vrot.lane.b32.xlu1 %v4333_v56, %s2510_s18  ;;  %v1369_v13 = vsel %vm1364_vm3, %v2410_v62, %v4336_v52  ;;  %v4342_v62 = vld [vmem:[#allocation20_spill] sm:$0xff] }
 0x152   : > { %1294 = vrot.lane.b32.xlu0 %v4333_v56, %s2513_s9  ;;  %v1402_v51 = vsel %vm1397_vm4, %v1369_v13, %v4338_v29  ;;  %v2413_v52 = vld [vmem:[%s2601_s30 + $0xf8] sm:$0xff]  ;;  %v2414_v29 = vld [vmem:[%s2601_s30 + $0x48] sm:$0xff] }
 0x153   : > { %v877_v7 = vpop.permute.xlu1 %876  ;;  %v1435_v56 = vsel %vm1430_vm5, %v1402_v51, %v3520_v6  ;;  %v4343_v51 = vld [vmem:[#allocation57_spill] sm:$0xff] }
 0x154   : > { %v1273_v31 = vpop.permute.xlu0 %1272  ;;  %v1468_v18 = vsel %vm1463_vm6, %v1435_v56, %v875_v47  ;;  %v4344_v56 = vld [vmem:[#allocation62_spill] sm:$0xff] }
 0x155   : > { %v1598_v25 = vsel %vm1595_vm10, %v1565_v11, %v1273_v31  ;;  %796 = vrot.lane.b32.xlu1 %v2788_v19, %s2508_s6  ;;  %v1403_v11 = vsel %vm1397_vm4, %v1370_v55, %v4340_v26  ;;  %v2415_v26 = vld [vmem:[%s2601_s30 + $0x50] sm:$0xff] }
 0x156   : > { %1093 = vrot.lane.b32.xlu0 %v2788_v19, %s2511_s29  ;;  %2281 = vmatprep.mubr.msk.f32.mxu0 %vm1633_vm11, %v1598_v25  ;;  %v1436_v6 = vsel %vm1430_vm5, %v1403_v11, %v3518_v48  ;;  %v4345_v11 = vld [vmem:[#allocation56_spill] sm:$0xff] }
 0x157   : > { %v1275_v1 = vpop.permute.xlu1 %1274  ;;  %v1469_v47 = vsel %vm1463_vm6, %v1436_v6, %v877_v7 }
 0x158   : > { %v1599_v42 = vsel %vm1595_vm10, %v1566_v8, %v1275_v1  ;;  %v976_v60 = vpop.permute.xlu0 %975 }
 0x159   : > { %1195 = vrot.lane.b32.xlu1 %v4334_v27, %s2512_s8  ;;  %2282 = vmatmul.mubr.msk.f32.gmra.mrb[2].mxu0 %vm1633_vm11, %v1599_v42  ;;  %v1501_v31 = vsel %vm1496_vm7, %v1468_v18, %v976_v60  ;;  %v4341_v60 = vld [vmem:[#allocation36_spill] sm:$0xff] }
 0x15a   : > { %1095 = vrot.lane.b32.xlu0 %v2782_v16, %s2511_s29 }
 0x15b   : > { %v1074_v32 = vpop.permute.xlu1 %1073 }
 0x15c   : > { %v978_v19 = vpop.permute.xlu0 %977  ;;  %v1534_v50 = vsel %vm1529_vm8, %v1501_v31, %v1074_v32  ;;  %v1372_v31 = vsel %vm1364_vm3, %v2415_v26, %v4345_v11  ;;  %v1440_v11 = vsel %vm1430_vm5, %v3321_v24, %v3534_v37 }
 0x15d   : > { %898 = vrot.lane.b32.xlu1 %v4334_v27, %s2509_s7  ;;  %v1502_v1 = vsel %vm1496_vm7, %v1469_v47, %v978_v19  ;;  %v4347_v47 = vld [vmem:[#allocation6_spill] sm:$0xff] }
 0x15e   : > { %798 = vrot.lane.b32.xlu0 %v2782_v16, %s2508_s6 }
 0x15f   : > { %v1176_v38 = vpop.permute.xlu1 %1175 }
 0x160   : > { %v1076_v54 = vpop.permute.xlu0 %1075  ;;  %v1567_v35 = vsel %vm1562_vm9, %v1534_v50, %v1176_v38  ;;  %v2412_v38 = vld [vmem:[%s2601_s30 + $0xf0] sm:$0xff] }
 0x161   : > { %1296 = vrot.lane.b32.xlu1 %v4335_v15, %s2513_s9  ;;  %v1535_v27 = vsel %vm1529_vm8, %v1502_v1, %v1076_v54  ;;  %v4346_v50 = vld [vmem:[#allocation39_spill] sm:$0xff] }
 0x162   : > { %1197 = vrot.lane.b32.xlu0 %v4337_v57, %s2512_s8  ;;  %v4348_v1 = vld [vmem:[#allocation19_spill] sm:$0xff] }
 0x163   : > { %v1178_v41 = vpop.permute.xlu1 %1177 }
 0x164   : > { %v879_v16 = vpop.permute.xlu0 %878  ;;  %v1568_v48 = vsel %vm1562_vm9, %v1535_v27, %v1178_v41  ;;  %v1371_v41 = vsel %vm1364_vm3, %v2414_v29, %v4343_v51  ;;  %v4350_v51 = vld [vmem:[#allocation22_spill] sm:$0xff] }
 0x165   : > { %999 = vrot.lane.b32.xlu1 %v4335_v15, %s2510_s18  ;;  %v1404_v3 = vsel %vm1397_vm4, %v1371_v41, %v4344_v56  ;;  %v2417_v41 = vld [vmem:[%s2601_s30 + $0x110] sm:$0xff] }
 0x166   : > { %900 = vrot.lane.b32.xlu0 %v4337_v57, %s2509_s7  ;;  %v1437_v55 = vsel %vm1430_vm5, %v1404_v3, %v3528_v34  ;;  %v1439_v3 = vsel %vm1430_vm5, %v3324_v17, %v3536_v58 }
 0x167   : > { %v881_v25 = vpop.permute.xlu1 %880  ;;  %v1470_v6 = vsel %vm1463_vm6, %v1437_v55, %v879_v16 }
 0x168   : > { %v1277_v8 = vpop.permute.xlu0 %1276 }
 0x169   : > { %v1600_v42 = vsel %vm1595_vm10, %v1567_v35, %v1277_v8  ;;  %1001 = vrot.lane.b32.xlu1 %v4341_v60, %s2510_s18  ;;  %v1405_v35 = vsel %vm1397_vm4, %v1372_v31, %v4347_v47 }
 0x16a   : > { %1298 = vrot.lane.b32.xlu0 %v4341_v60, %s2513_s9  ;;  %2284 = vmatprep.mubr.msk.f32.mxu0 %vm1633_vm11, %v1600_v42  ;;  %v1438_v34 = vsel %vm1430_vm5, %v1405_v35, %v3526_v46  ;;  %v4351_v35 = vld [vmem:[#allocation41_spill] sm:$0xff] }
 0x16b   : > { %v1279_v7 = vpop.permute.xlu1 %1278  ;;  %v1471_v27 = vsel %vm1463_vm6, %v1438_v34, %v881_v25 }
 0x16c   : > { %v1601_v32 = vsel %vm1595_vm10, %v1568_v48, %v1279_v7  ;;  %v980_v19 = vpop.permute.xlu0 %979 }
 0x16d   : > { %800 = vrot.lane.b32.xlu1 %v2412_v38, %s2508_s6  ;;  %2285 = vmatmul.mubr.msk.f32.gmra.mrb[4].mxu0 %vm1633_vm11, %v1601_v32  ;;  %v1503_v8 = vsel %vm1496_vm7, %v1470_v6, %v980_v19 }
 0x16e   : > { %1097 = vrot.lane.b32.xlu0 %v2412_v38, %s2511_s29 }
 0x16f   : > { %v1078_v54 = vpop.permute.xlu1 %1077 }
 0x170   : > { %v982_v15 = vpop.permute.xlu0 %981  ;;  %v1536_v42 = vsel %vm1529_vm8, %v1503_v8, %v1078_v54 }
 0x171   : > { %1199 = vrot.lane.b32.xlu1 %v4342_v62, %s2512_s8  ;;  %v1504_v7 = vsel %vm1496_vm7, %v1471_v27, %v982_v15  ;;  %v4349_v15 = vld [vmem:[#allocation38_spill] sm:$0xff] }
 0x172   : > { %1099 = vrot.lane.b32.xlu0 %v2413_v52, %s2511_s29 }
 0x173   : > { %v1180_v13 = vpop.permute.xlu1 %1179 }
 0x174   : > { %v1080_v57 = vpop.permute.xlu0 %1079  ;;  %v1569_v16 = vsel %vm1562_vm9, %v1536_v42, %v1180_v13  ;;  %v2416_v13 = vld [vmem:[%s2601_s30 + $0x108] sm:$0xff] }
 0x175   : > { %902 = vrot.lane.b32.xlu1 %v4342_v62, %s2509_s7  ;;  %v1537_v19 = vsel %vm1529_vm8, %v1504_v7, %v1080_v57 }
 0x176   : > { %802 = vrot.lane.b32.xlu0 %v2413_v52, %s2508_s6 }
 0x177   : > { %v1182_v39 = vpop.permute.xlu1 %1181 }
 0x178   : > { %v883_v18 = vpop.permute.xlu0 %882  ;;  %v1570_v46 = vsel %vm1562_vm9, %v1537_v19, %v1182_v39  ;;  %v1441_v19 = vsel %vm1430_vm5, %v3340_v22, %v3544_v53 }
 0x179   : > { %1300 = vrot.lane.b32.xlu1 %v4346_v50, %s2513_s9  ;;  %v1472_v55 = vsel %vm1463_vm6, %v1439_v3, %v883_v18  ;;  %v4355_v3 = vld [vmem:[#allocation43_spill] sm:$0xff] }
 0x17a   : > { %1201 = vrot.lane.b32.xlu0 %v4348_v1, %s2512_s8 }
 0x17b   : > { %v885_v60 = vpop.permute.xlu1 %884 }
 0x17c   : > { %v1281_v48 = vpop.permute.xlu0 %1280 }
 0x17d   : > { %v1602_v32 = vsel %vm1595_vm10, %v1569_v16, %v1281_v48  ;;  %1003 = vrot.lane.b32.xlu1 %v4346_v50, %s2510_s18  ;;  %v1473_v50 = vsel %vm1463_vm6, %v1440_v11, %v885_v60  ;;  %v4353_v16 = vld [vmem:[#allocation40_spill] sm:$0xff] }
 0x17e   : > { %904 = vrot.lane.b32.xlu0 %v4348_v1, %s2509_s7  ;;  %2287 = vmatprep.mubr.msk.f32.mxu0 %vm1633_vm11, %v1602_v32  ;;  %v4352_v1 = vld [vmem:[#allocation21_spill] sm:$0xff] }
 0x17f   : > { %v1283_v25 = vpop.permute.xlu1 %1282  ;;  %v2418_v32 = vld [vmem:[%s2601_s30 + $0x120] sm:$0xff] }
 0x180   : > { %v1603_v38 = vsel %vm1595_vm10, %v1570_v46, %v1283_v25  ;;  %v984_v54 = vpop.permute.xlu0 %983 }
 0x181   : > { %1005 = vrot.lane.b32.xlu1 %v4349_v15, %s2510_s18  ;;  %2288 = vmatmul.mubr.msk.f32.gmra.mrb[6].mxu0 %vm1633_vm11, %v1603_v38  ;;  %v1505_v26 = vsel %vm1496_vm7, %v1472_v55, %v984_v54  ;;  %v4356_v55 = vld [vmem:[#allocation23_spill] sm:$0xff] }
 0x182   : > { %1302 = vrot.lane.b32.xlu0 %v4349_v15, %s2513_s9  ;;  %v4354_v15 = vld [vmem:[#allocation24_spill] sm:$0xff] }
 0x183   : > { %v1082_v62 = vpop.permute.xlu1 %1081 }
 0x184   : > { %v986_v52 = vpop.permute.xlu0 %985  ;;  %v1538_v31 = vsel %vm1529_vm8, %v1505_v26, %v1082_v62 }
 0x185   : > { %804 = vrot.lane.b32.xlu1 %v2416_v13, %s2508_s6  ;;  %v1506_v18 = vsel %vm1496_vm7, %v1473_v50, %v986_v52  ;;  %v2419_v52 = vld [vmem:[%s2601_s30 + $0x128] sm:$0xff] }
 0x186   : > { %1101 = vrot.lane.b32.xlu0 %v2416_v13, %s2511_s29 }
 0x187   : > { %v1184_v57 = vpop.permute.xlu1 %1183 }
 0x188   : > { %v1084_v29 = vpop.permute.xlu0 %1083  ;;  %v1571_v17 = vsel %vm1562_vm9, %v1538_v31, %v1184_v57 }
 0x189   : > { %1203 = vrot.lane.b32.xlu1 %v4350_v51, %s2512_s8  ;;  %v1539_v8 = vsel %vm1529_vm8, %v1506_v18, %v1084_v29 }
 0x18a   : > { %1103 = vrot.lane.b32.xlu0 %v2417_v41, %s2511_s29 }
 0x18b   : > { %v1186_v56 = vpop.permute.xlu1 %1185 }
 0x18c   : > { %v887_v39 = vpop.permute.xlu0 %886  ;;  %v1572_v24 = vsel %vm1562_vm9, %v1539_v8, %v1186_v56 }
 0x18d   : > { %906 = vrot.lane.b32.xlu1 %v4350_v51, %s2509_s7  ;;  %v1474_v25 = vsel %vm1463_vm6, %v1441_v19, %v887_v39  ;;  %v1442_v51 = vsel %vm1430_vm5, %v3337_v14, %v3542_v40 }
 0x18e   : > { %806 = vrot.lane.b32.xlu0 %v2417_v41, %s2508_s6 }
 0x18f   : > { %v889_v6 = vpop.permute.xlu1 %888 }
 0x190   : > { %v1285_v58 = vpop.permute.xlu0 %1284  ;;  %v1475_v56 = vsel %vm1463_vm6, %v1442_v51, %v889_v6  ;;  %v2422_v51 = vld [vmem:[%s2601_s30 + $0x150] sm:$0xff] }
 0x191   : > { %v1604_v47 = vsel %vm1595_vm10, %v1571_v17, %v1285_v58  ;;  %1304 = vrot.lane.b32.xlu1 %v4351_v35, %s2513_s9  ;;  %v4357_v17 = vld [vmem:[#allocation42_spill] sm:$0xff] }
 0x192   : > { %1205 = vrot.lane.b32.xlu0 %v4352_v1, %s2512_s8  ;;  %2290 = vmatprep.mubr.msk.f32.mxu0 %vm1633_vm11, %v1604_v47  ;;  %v2420_v47 = vld [vmem:[%s2601_s30 + $0x138] sm:$0xff] }
 0x193   : > { %v1287_v37 = vpop.permute.xlu1 %1286 }
 0x194   : > { %v1605_v34 = vsel %vm1595_vm10, %v1572_v24, %v1287_v37  ;;  %v988_v42 = vpop.permute.xlu0 %987 }
 0x195   : > { %1007 = vrot.lane.b32.xlu1 %v4351_v35, %s2510_s18  ;;  %2291 = vmatmul.mubr.msk.f32.gmra.mrb[8].mxu0 %vm1633_vm11, %v1605_v34  ;;  %v1507_v54 = vsel %vm1496_vm7, %v1474_v25, %v988_v42  ;;  %v1443_v35 = vsel %vm1430_vm5, %v3356_v21, %v3550_v59  ;;  %v4358_v34 = vld [vmem:[#allocation26_spill] sm:$0xff] }
 0x196   : > { %908 = vrot.lane.b32.xlu0 %v4352_v1, %s2509_s7 }
 0x197   : > { %v1086_v60 = vpop.permute.xlu1 %1085 }
 0x198   : > { %v990_v27 = vpop.permute.xlu0 %989  ;;  %v1540_v62 = vsel %vm1529_vm8, %v1507_v54, %v1086_v60  ;;  %v2421_v60 = vld [vmem:[%s2601_s30 + $0x140] sm:$0xff] }
 0x199   : > { %1009 = vrot.lane.b32.xlu1 %v4353_v16, %s2510_s18  ;;  %v1508_v39 = vsel %vm1496_vm7, %v1475_v56, %v990_v27  ;;  %v4360_v54 = vld [vmem:[#allocation25_spill] sm:$0xff] }
 0x19a   : > { %1306 = vrot.lane.b32.xlu0 %v4353_v16, %s2513_s9 }
 0x19b   : > { %v1188_v48 = vpop.permute.xlu1 %1187 }
 0x19c   : > { %v1088_v7 = vpop.permute.xlu0 %1087  ;;  %v1573_v13 = vsel %vm1562_vm9, %v1540_v62, %v1188_v48 }
 0x19d   : > { %808 = vrot.lane.b32.xlu1 %v2418_v32, %s2508_s6  ;;  %v1541_v26 = vsel %vm1529_vm8, %v1508_v39, %v1088_v7 }
 0x19e   : > { %1105 = vrot.lane.b32.xlu0 %v2418_v32, %s2511_s29 }
 0x19f   : > { %v891_v46 = vpop.permute.xlu1 %890 }
 0x1a0   : > { %v791_v38 = vpop.permute.xlu0 %790  ;;  %v1476_v1 = vsel %vm1463_vm6, %v1443_v35, %v891_v46  ;;  %v4359_v46 = vld [vmem:[#allocation46_spill] sm:$0xff] }
 0x1a1   : > { %1207 = vrot.lane.b32.xlu1 %v4354_v15, %s2512_s8  ;;  %v1444_v7 = vsel %vm1430_vm5, %v3353_v28, %v791_v38 }
 0x1a2   : > { %1107 = vrot.lane.b32.xlu0 %v2419_v52, %s2511_s29 }
 0x1a3   : > { %v1289_v57 = vpop.permute.xlu1 %1288 }
 0x1a4   : > { %v1606_v29 = vsel %vm1595_vm10, %v1573_v13, %v1289_v57  ;;  %v1190_v22 = vpop.permute.xlu0 %1189 }
 0x1a5   : > { %910 = vrot.lane.b32.xlu1 %v4354_v15, %s2509_s7  ;;  %2293 = vmatprep.mubr.msk.f32.mxu0 %vm1633_vm11, %v1606_v29  ;;  %v1574_v31 = vsel %vm1562_vm9, %v1541_v26, %v1190_v22  ;;  %v4361_v29 = vld [vmem:[#allocation44_spill] sm:$0xff] }
 0x1a6   : > { %810 = vrot.lane.b32.xlu0 %v2419_v52, %s2508_s6  ;;  %v4362_v26 = vld [vmem:[#allocation28_spill] sm:$0xff] }
 0x1a7   : > { %v992_v53 = vpop.permute.xlu1 %991 }
 0x1a8   : > { %v893_v41 = vpop.permute.xlu0 %892  ;;  %v1509_v37 = vsel %vm1496_vm7, %v1476_v1, %v992_v53 }
 0x1a9   : > { %1308 = vrot.lane.b32.xlu1 %v4355_v3, %s2513_s9  ;;  %v1477_v19 = vsel %vm1463_vm6, %v1444_v7, %v893_v41 }
 0x1aa   : > { %1209 = vrot.lane.b32.xlu0 %v4356_v55, %s2512_s8 }
 0x1ab   : > { %v994_v11 = vpop.permute.xlu1 %993 }
 0x1ac   : > { %v1291_v50 = vpop.permute.xlu0 %1290  ;;  %v1510_v25 = vsel %vm1496_vm7, %v1477_v19, %v994_v11 }
 0x1ad   : > { %v1607_v14 = vsel %vm1595_vm10, %v1574_v31, %v1291_v50  ;;  %1011 = vrot.lane.b32.xlu1 %v4355_v3, %s2510_s18  ;;  %v2423_v31 = vld [vmem:[%s2601_s30 + $0x158] sm:$0xff] }
 0x1ae   : > { %912 = vrot.lane.b32.xlu0 %v4356_v55, %s2509_s7  ;;  %2294 = vmatmul.mubr.msk.f32.gmra.mrb[10].mxu0 %vm1633_vm11, %v1607_v14 }
 0x1af   : > { %v793_v40 = vpop.permute.xlu1 %792 }
 0x1b0   : > { %v1090_v6 = vpop.permute.xlu0 %1089  ;;  %v1445_v41 = vsel %vm1430_vm5, %v3372_v23, %v793_v40 }
 0x1b1   : > { %1013 = vrot.lane.b32.xlu1 %v4357_v17, %s2510_s18  ;;  %v1542_v42 = vsel %vm1529_vm8, %v1509_v37, %v1090_v6 }
 0x1b2   : > { %1310 = vrot.lane.b32.xlu0 %v4357_v17, %s2513_s9 }
 0x1b3   : > { %v1192_v58 = vpop.permute.xlu1 %1191 }
 0x1b4   : > { %v1092_v18 = vpop.permute.xlu0 %1091  ;;  %v1575_v27 = vsel %vm1562_vm9, %v1542_v42, %v1192_v58 }
 0x1b5   : > { %812 = vrot.lane.b32.xlu1 %v2420_v47, %s2508_s6  ;;  %v1543_v15 = vsel %vm1529_vm8, %v1510_v25, %v1092_v18  ;;  %v4366_v25 = vld [vmem:[#allocation30_spill] sm:$0xff] }
 0x1b6   : > { %1109 = vrot.lane.b32.xlu0 %v2420_v47, %s2511_s29  ;;  %v4363_v47 = vld [vmem:[#allocation50_spill] sm:$0xff] }
 0x1b7   : > { %v895_v8 = vpop.permute.xlu1 %894 }
 0x1b8   : > { %v795_v24 = vpop.permute.xlu0 %794  ;;  %v1478_v3 = vsel %vm1463_vm6, %v1445_v41, %v895_v8  ;;  %v4364_v8 = vld [vmem:[#allocation27_spill] sm:$0xff] }
 0x1b9   : > { %1211 = vrot.lane.b32.xlu1 %v4358_v34, %s2512_s8  ;;  %v1446_v17 = vsel %vm1430_vm5, %v3369_v45, %v795_v24 }
 0x1ba   : > { %1111 = vrot.lane.b32.xlu0 %v2421_v60, %s2511_s29 }
 0x1bb   : > { %v1293_v16 = vpop.permute.xlu1 %1292 }
 0x1bc   : > { %v1608_v48 = vsel %vm1595_vm10, %v1575_v27, %v1293_v16  ;;  %v1194_v21 = vpop.permute.xlu0 %1193  ;;  %v4365_v27 = vld [vmem:[#allocation48_spill] sm:$0xff] }
 0x1bd   : > { %914 = vrot.lane.b32.xlu1 %v4358_v34, %s2509_s7  ;;  %2296 = vmatprep.mubr.msk.f32.mxu0 %vm1633_vm11, %v1608_v48  ;;  %v1576_v52 = vsel %vm1562_vm9, %v1543_v15, %v1194_v21  ;;  %v2424_v21 = vld [vmem:[%s2601_s30 + $0x168] sm:$0xff]  ;;  %v2425_v15 = vld [vmem:[%s2601_s30 + $0x170] sm:$0xff]  ;;  %s2230_s30 = sadd.s32 384, %s2340_s27  ;;  %s2189_s27 = sshll.u32 %s256_s26, 1 }
 0x1be   : > { %814 = vrot.lane.b32.xlu0 %v2421_v60, %s2508_s6  ;;  %s3932_s19 = scalar_lea.vmem %s4158_s1, %s2230_s30 }
 0x1bf   : > { %v996_v59 = vpop.permute.xlu1 %995 }
 0x1c0   : > { %v897_v32 = vpop.permute.xlu0 %896  ;;  %v1511_v55 = vsel %vm1496_vm7, %v1478_v3, %v996_v59 }
 0x1c1   : > { %1312 = vrot.lane.b32.xlu1 %v4359_v46, %s2513_s9  ;;  %v1479_v18 = vsel %vm1463_vm6, %v1446_v17, %v897_v32 }
 0x1c2   : > { %1213 = vrot.lane.b32.xlu0 %v4360_v54, %s2512_s8 }
 0x1c3   : > { %v998_v62 = vpop.permute.xlu1 %997 }
 0x1c4   : > { %v1295_v13 = vpop.permute.xlu0 %1294  ;;  %v1512_v35 = vsel %vm1496_vm7, %v1479_v18, %v998_v62 }
 0x1c5   : > { %v1609_v28 = vsel %vm1595_vm10, %v1576_v52, %v1295_v13  ;;  %1015 = vrot.lane.b32.xlu1 %v4359_v46, %s2510_s18 }
 0x1c6   : > { %916 = vrot.lane.b32.xlu0 %v4360_v54, %s2509_s7  ;;  %2297 = vmatmul.mubr.msk.f32.gmra.mrb[12].mxu0 %vm1633_vm11, %v1609_v28 }
 0x1c7   : > { %v797_v38 = vpop.permute.xlu1 %796 }
 0x1c8   : > { %v1094_v57 = vpop.permute.xlu0 %1093  ;;  %v1447_v59 = vsel %vm1430_vm5, %v3388_v5, %v797_v38 }
 0x1c9   : > { %1017 = vrot.lane.b32.xlu1 %v4361_v29, %s2510_s18  ;;  %v1544_v11 = vsel %vm1529_vm8, %v1511_v55, %v1094_v57 }
 0x1ca   : > { %1314 = vrot.lane.b32.xlu0 %v4361_v29, %s2513_s9 }
 0x1cb   : > { %v1196_v22 = vpop.permute.xlu1 %1195 }
 0x1cc   : > { %v1096_v53 = vpop.permute.xlu0 %1095  ;;  %v1577_v50 = vsel %vm1562_vm9, %v1544_v11, %v1196_v22  ;;  %v4367_v22 = vld [vmem:[#allocation54_spill] sm:$0xff] }
 0x1cd   : > { %816 = vrot.lane.b32.xlu1 %v2422_v51, %s2508_s6  ;;  %v1545_v1 = vsel %vm1529_vm8, %v1512_v35, %v1096_v53  ;;  %v355_v11 = vld [vmem:[%s3932_s19 + $0x8] sm:$0xff] }
 0x1ce   : > { %1113 = vrot.lane.b32.xlu0 %v2422_v51, %s2511_s29  ;;  %v4368_v51 = vld [vmem:[#allocation29_spill] sm:$0xff] }
 0x1cf   : > { %v899_v56 = vpop.permute.xlu1 %898 }
 0x1d0   : > { %v799_v39 = vpop.permute.xlu0 %798  ;;  %v1480_v32 = vsel %vm1463_vm6, %v1447_v59, %v899_v56 }
 0x1d1   : > { %1215 = vrot.lane.b32.xlu1 %v4362_v26, %s2512_s8  ;;  %v1448_v38 = vsel %vm1430_vm5, %v3385_v20, %v799_v39 }
 0x1d2   : > { %1115 = vrot.lane.b32.xlu0 %v2423_v31, %s2511_s29 }
 0x1d3   : > { %v1297_v14 = vpop.permute.xlu1 %1296 }
 0x1d4   : > { %v1610_v6 = vsel %vm1595_vm10, %v1577_v50, %v1297_v14  ;;  %v1198_v23 = vpop.permute.xlu0 %1197  ;;  %v4369_v50 = vld [vmem:[#allocation52_spill] sm:$0xff] }
 0x1d5   : > { %918 = vrot.lane.b32.xlu1 %v4362_v26, %s2509_s7  ;;  %2299 = vmatprep.mubr.msk.f32.mxu0 %vm1633_vm11, %v1610_v6  ;;  %v1578_v34 = vsel %vm1562_vm9, %v1545_v1, %v1198_v23  ;;  %v354_v26 = vld [vmem:[%s3932_s19] sm:$0xff]  ;;  %v862_v6 = vrot.slane %v355_v11, 1 }
 0x1d6   : > { %818 = vrot.lane.b32.xlu0 %v2423_v31, %s2508_s6  ;;  %v861_v14 = vrot.slane %v354_v26, 1 }
 0x1d7   : > { %v1000_v40 = vpop.permute.xlu1 %999 }
 0x1d8   : > { %v901_v58 = vpop.permute.xlu0 %900  ;;  %v1513_v46 = vsel %vm1496_vm7, %v1480_v32, %v1000_v40  ;;  %v863_v17 = vsel %vm408_vm0, %v861_v14, %v862_v6 }
 0x1d9   : > { %1316 = vrot.lane.b32.xlu1 %v4363_v47, %s2513_s9  ;;  %v1481_v29 = vsel %vm1463_vm6, %v1448_v38, %v901_v58 }
 0x1da   : > { %1217 = vrot.lane.b32.xlu0 %v4364_v8, %s2512_s8 }
 0x1db   : > { %v1002_v37 = vpop.permute.xlu1 %1001 }
 0x1dc   : > { %v1299_v42 = vpop.permute.xlu0 %1298  ;;  %v1514_v53 = vsel %vm1496_vm7, %v1481_v29, %v1002_v37 }
 0x1dd   : > { %v1611_v45 = vsel %vm1595_vm10, %v1578_v34, %v1299_v42  ;;  %1019 = vrot.lane.b32.xlu1 %v4363_v47, %s2510_s18  ;;  %v962_v34 = vrot.slane %v354_v26, 2  ;;  %v963_v42 = vrot.slane %v355_v11, 2 }
 0x1de   : > { %920 = vrot.lane.b32.xlu0 %v4364_v8, %s2509_s7  ;;  %2300 = vmatmul.mubr.msk.f32.gmra.mrb[14].mxu0 %vm1633_vm11, %v1611_v45  ;;  %v356_v8 = vld [vmem:[%s3932_s19 + $0x10] sm:$0x3] }
 0x1df   : > { %v801_v24 = vpop.permute.xlu1 %800 }
 0x1e0   : > { %v1098_v60 = vpop.permute.xlu0 %1097  ;;  %v1449_v58 = vsel %vm1430_vm5, %v3404_v43, %v801_v24  ;;  %v864_v43 = vrot.slane %v356_v8, 1 }
 0x1e1   : > { %1021 = vrot.lane.b32.xlu1 %v4365_v27, %s2510_s18  ;;  %v1546_v54 = vsel %vm1529_vm8, %v1513_v46, %v1098_v60 }
 0x1e2   : > { %1318 = vrot.lane.b32.xlu0 %v4365_v27, %s2513_s9 }
 0x1e3   : > { %v1200_v16 = vpop.permute.xlu1 %1199 }
 0x1e4   : > { %v1100_v48 = vpop.permute.xlu0 %1099  ;;  %v1579_v62 = vsel %vm1562_vm9, %v1546_v54, %v1200_v16  ;;  %v964_v16 = vsel %vm585_vm1, %v962_v34, %v963_v42 }
 0x1e5   : > { %820 = vrot.lane.b32.xlu1 %v2424_v21, %s2508_s6  ;;  %v1547_v41 = vsel %vm1529_vm8, %v1514_v53, %v1100_v48 }
 0x1e6   : > { %1117 = vrot.lane.b32.xlu0 %v2424_v21, %s2511_s29  ;;  %v865_v21 = vsel %vm408_vm0, %v862_v6, %v864_v43 }
 0x1e7   : > { %v903_v7 = vpop.permute.xlu1 %902 }
 0x1e8   : > { %v3903_v19 = vpop.permute.xlu0 %802  ;;  %v1482_v47 = vsel %vm1463_vm6, %v1449_v58, %v903_v7 }
 0x1e9   : > { %1219 = vrot.lane.b32.xlu1 %v4366_v25, %s2512_s8  ;;  %v1450_v59 = vsel %vm1430_vm5, %v3401_v0, %v3903_v19 }
 0x1ea   : > { %1119 = vrot.lane.b32.xlu0 %v2425_v15, %s2511_s29 }
 0x1eb   : > { %v1301_v52 = vpop.permute.xlu1 %1300 }
 0x1ec   : > { %v1202_v5 = vpop.permute.xlu0 %1201  ;;  %v1612_v13 = vsel %vm1595_vm10, %v1579_v62, %v1301_v52 }
 0x1ed   : > { %922 = vrot.lane.b32.xlu1 %v4366_v25, %s2509_s7  ;;  %2302 = vmatprep.mubr.msk.f32.mxu1 %vm1633_vm11, %v1612_v13  ;;  %v1580_v3 = vsel %vm1562_vm9, %v1547_v41, %v1202_v5  ;;  %v965_v25 = vrot.slane %v356_v8, 2  ;;  %v358_v13 = vld [vmem:[%s3932_s19 + $0x20] sm:$0xff] }
 0x1ee   : > { %822 = vrot.lane.b32.xlu0 %v2425_v15, %s2508_s6  ;;  %v1163_v29 = vrot.slane %v358_v13, 1 }
 0x1ef   : > { %v1004_v28 = vpop.permute.xlu1 %1003  ;;  %v966_v19 = vsel %vm585_vm1, %v963_v42, %v965_v25 }
 0x1f0   : > { %v905_v57 = vpop.permute.xlu0 %904  ;;  %v1515_v1 = vsel %vm1496_vm7, %v1482_v47, %v1004_v28  ;;  %v359_v28 = vld [vmem:[%s3932_s19 + $0x28] sm:$0x3] }
 0x1f1   : > { %1320 = vrot.lane.b32.xlu1 %v4367_v22, %s2513_s9  ;;  %v1483_v32 = vsel %vm1463_vm6, %v1450_v59, %v905_v57  ;;  %v357_v57 = vld [vmem:[%s3932_s19 + $0x18] sm:$0xff] }
 0x1f2   : > { %1221 = vrot.lane.b32.xlu0 %v4368_v51, %s2512_s8 }
 0x1f3   : > { %v1006_v56 = vpop.permute.xlu1 %1005 }
 0x1f4   : > { %v1303_v55 = vpop.permute.xlu0 %1302  ;;  %v1516_v46 = vsel %vm1496_vm7, %v1483_v32, %v1006_v56  ;;  %v1264_v56 = vrot.slane %v358_v13, 2 }
 0x1f5   : > { %v1613_v20 = vsel %vm1595_vm10, %v1580_v3, %v1303_v55  ;;  %1023 = vrot.lane.b32.xlu1 %v4367_v22, %s2510_s18  ;;  %v1165_v22 = vrot.slane %v359_v28, 1  ;;  %v1266_v55 = vrot.slane %v359_v28, 2 }
 0x1f6   : > { %924 = vrot.lane.b32.xlu0 %v4368_v51, %s2509_s7  ;;  %2303 = vmatmul.mubr.msk.f32.vlgmr.msra.gmra.mrb[0].mxu1 %vm1633_vm11, %v1613_v20  ;;  %v1162_v51 = vrot.slane %v357_v57, 1 }
 0x1f7   : > { %v3940_v39 = vpop.permute.xlu1 %804  ;;  %v1166_v3 = vsel %vm408_vm0, %v1163_v29, %v1165_v22 }
 0x1f8   : > { %v1102_v31 = vpop.permute.xlu0 %1101  ;;  %v1451_v20 = vsel %vm1430_vm5, %v3420_v10, %v3940_v39  ;;  %v1267_v10 = vsel %vm585_vm1, %v1264_v56, %v1266_v55 }
 0x1f9   : > { %1025 = vrot.lane.b32.xlu1 %v4369_v50, %s2510_s18  ;;  %v1548_v37 = vsel %vm1529_vm8, %v1515_v1, %v1102_v31  ;;  %v1164_v31 = vsel %vm408_vm0, %v1162_v51, %v1163_v29 }
 0x1fa   : > { %1322 = vrot.lane.b32.xlu0 %v4369_v50, %s2513_s9 }
 0x1fb   : > { %v1204_v23 = vpop.permute.xlu1 %1203 }
 0x1fc   : > { %v1104_v40 = vpop.permute.xlu0 %1103  ;;  %v1581_v45 = vsel %vm1562_vm9, %v1548_v37, %v1204_v23 }
 0x1fd   : > { %824 = vrot.lane.b32.xlu1 %v354_v26, %s2508_s6  ;;  %v1549_v54 = vsel %vm1529_vm8, %v1516_v46, %v1104_v40 }
 0x1fe   : > { %1121 = vrot.lane.b32.xlu0 %v354_v26, %s2511_s29  ;;  %v1263_v26 = vrot.slane %v357_v57, 2 }
 0x1ff   : > { %v907_v18 = vpop.permute.xlu1 %906 }
 0x200   : > { %v3954_v35 = vpop.permute.xlu0 %806  ;;  %v1484_v50 = vsel %vm1463_vm6, %v1451_v20, %v907_v18  ;;  %v1265_v18 = vsel %vm585_vm1, %v1263_v26, %v1264_v56 }
 0x201   : > { %1223 = vrot.lane.b32.xlu1 %v863_v17, %s2512_s8 }
 0x202   : > { %1123 = vrot.lane.b32.xlu0 %v355_v11, %s2511_s29 }
 0x203   : > { %v1305_v60 = vpop.permute.xlu1 %1304 }
 0x204   : > { %v1614_v24 = vsel %vm1595_vm10, %v1581_v45, %v1305_v60  ;;  %v1206_v27 = vpop.permute.xlu0 %1205  ;;  %v1452_v60 = vsel %vm1430_vm5, %v3417_v30, %v3954_v35 }
 0x205   : > { %926 = vrot.lane.b32.xlu1 %v863_v17, %s2509_s7  ;;  %2305 = vmatprep.mubr.msk.f32.mxu1 %vm1633_vm11, %v1614_v24  ;;  %v1582_v62 = vsel %vm1562_vm9, %v1549_v54, %v1206_v27 }
 0x206   : > { %826 = vrot.lane.b32.xlu0 %v355_v11, %s2508_s6  ;;  %s4098_s6 = scalar_lea.vmem [#allocation2], %s2189_s27 }
 0x207   : > { %v1008_v48 = vpop.permute.xlu1 %1007 }
 0x208   : > { %v909_v7 = vpop.permute.xlu0 %908  ;;  %v1517_v23 = vsel %vm1496_vm7, %v1484_v50, %v1008_v48 }
 0x209   : > { %1324 = vrot.lane.b32.xlu1 %v964_v16, %s2513_s9  ;;  %v1485_v24 = vsel %vm1463_vm6, %v1452_v60, %v909_v7 }
 0x20a   : > { %1225 = vrot.lane.b32.xlu0 %v865_v21, %s2512_s8 }
 0x20b   : > { %v1010_v15 = vpop.permute.xlu1 %1009 }
 0x20c   : > { %v1307_v52 = vpop.permute.xlu0 %1306  ;;  %v1518_v27 = vsel %vm1496_vm7, %v1485_v24, %v1010_v15 }
 0x20d   : > { %v1615_v0 = vsel %vm1595_vm10, %v1582_v62, %v1307_v52  ;;  %1027 = vrot.lane.b32.xlu1 %v964_v16, %s2510_s18 }
 0x20e   : > { %928 = vrot.lane.b32.xlu0 %v865_v21, %s2509_s7  ;;  %2306 = vmatmul.mubr.msk.f32.gmra.mrb[2].mxu1 %vm1633_vm11, %v1615_v0  ;;  %s2226_s7 = sshll.u32 %s2496_s15, 5  ;;  %s2515_s15 = smov [#allocation2]  }
 0x20f   : > { %v809_v5 = vpop.permute.xlu1 %808  ;;  %s4107_s28 = scalar_lea.hbm %s4160_s3, %s2226_s7  ;;  %s2430_s5 = sshll.u32 %s2515_s15, 4  ;;  %s2431_s5 = int_to_ptr.vmem [resolvable:$false] %s2430_s5 }
 0x210   : > { %v1106_v38 = vpop.permute.xlu0 %1105  ;;  %v1453_v15 = vsel %vm1430_vm5, %v3436_v36, %v809_v5 }
 0x211   : > { %1029 = vrot.lane.b32.xlu1 %v966_v19, %s2510_s18  ;;  %v1550_v58 = vsel %vm1529_vm8, %v1517_v23, %v1106_v38  ;;  %s2084_s18 = sshll.u32 %s4098_s6, 4  ;;  %s4109_s18 = int_to_ptr.vmem [resolvable:$true] %s2084_s18 }
 0x212   : > { %1326 = vrot.lane.b32.xlu0 %v966_v19, %s2513_s9  ;;  %s2426_s4 = scalar_lea.vmem %s4109_s18, 32  ;;  %p2433_p1 = scmp.lt.s32.totalorder %s4109_s18, %s2431_s5 }
 0x213   : > { %v1208_v53 = vpop.permute.xlu1 %1207  ;;  %p2427_p12 = scmp.ne.s32.totalorder %s4109_s18, %s2426_s4 }
 0x214   : > { %v1108_v41 = vpop.permute.xlu0 %1107  ;;  %v1583_v39 = vsel %vm1562_vm9, %v1550_v58, %v1208_v53 }
 0x215   : > { %1127 = vrot.lane.b32.xlu1 %v358_v13, %s2511_s29  ;;  %v1551_v16 = vsel %vm1529_vm8, %v1518_v27, %v1108_v41  ;;  %p2428_p13 = pnand %p2427_p12, %p2576_p4 }
 0x216   : > { %1125 = vrot.lane.b32.xlu0 %v357_v57, %s2511_s29  ;;  %s2071_s29 = scalar_lea.sflag [#allocation3], %s256_s26 }
 0x217   : > { %v911_v11 = vpop.permute.xlu1 %910  ;;  %p2429_p0 = pneg %p2428_p13 }
 0x218   : > { %v811_v14 = vpop.permute.xlu0 %810  ;;  %v2280_v6 = vpop.f32.mrb[0].mxu0  ;;  %v1486_v19 = vsel %vm1463_vm6, %v1453_v15, %v911_v11 }
 0x219   : > { %v1997_v40 = vmul.f32 %v2280_v6, %v2280_v6  ;;  %1229 = vrot.lane.b32.xlu1 %v1166_v3, %s2512_s8  ;;  %v1800_v17 = vpop.f32.mrb[1].mxu0  ;;  %v1454_v5 = vsel %vm1430_vm5, %v3433_v63, %v811_v14 }
 0x21a   : > { %v1959_v47 = vadd.f32 %v2280_v6, %v1800_v17  ;;  %v1996_v8 = vmul.f32 %v1800_v17, %v1800_v17  ;;  %1227 = vrot.lane.b32.xlu0 %v1164_v31, %s2512_s8  ;;  %s2432_s8 = scalar_lea.vmem %s2431_s5, 64 }
 0x21b   : > { %v1309_v1 = vpop.permute.xlu1 %1308  ;;  %p2434_p2 = scmp.lt.s32.totalorder %s2432_s8, %s2426_s4 }
 0x21c   : > { %v2028_v37 = vadd.f32 %v1997_v40, %v1996_v8  ;;  %v1616_v34 = vsel %vm1595_vm10, %v1583_v39, %v1309_v1  ;;  %v1210_v42 = vpop.permute.xlu0 %1209 }
 0x21d   : > { %1330 = vrot.lane.b32.xlu1 %v1267_v10, %s2513_s9  ;;  %2308 = vmatprep.mubr.msk.f32.mxu1 %vm1633_vm11, %v1616_v34  ;;  %v1584_v21 = vsel %vm1562_vm9, %v1551_v16, %v1210_v42  ;;  %p2435_p3 = por %p2434_p2, %p2433_p1 }
 0x21e   : > { %1328 = vrot.lane.b32.xlu0 %v1265_v18, %s2513_s9 }
 0x21f   : > { %v1012_v45 = vpop.permute.xlu1 %1011  ;;  %p2436_p5 = pnand %p2435_p3, %p2429_p0 }
 0x220   : > { %v913_v43 = vpop.permute.xlu0 %912  ;;  %v1519_v29 = vsel %vm1496_vm7, %v1486_v19, %v1012_v45 }
 0x221   : > { %v1487_v20 = vsel %vm1463_vm6, %v1454_v5, %v913_v43 }
 0x223   : > { %v1014_v48 = vpop.permute.xlu1 %1013 }
 0x224   : > { %v1311_v59 = vpop.permute.xlu0 %1310  ;;  %v1520_v26 = vsel %vm1496_vm7, %v1487_v20, %v1014_v48 }
 0x225   : > { %v1617_v32 = vsel %vm1595_vm10, %v1584_v21, %v1311_v59 }
 0x226   : > { %2309 = vmatmul.mubr.msk.f32.gmra.mrb[4].mxu1 %vm1633_vm11, %v1617_v32 }
 0x227   : > { %v813_v46 = vpop.permute.xlu1 %812 }
 0x228   : > { %v1110_v25 = vpop.permute.xlu0 %1109  ;;  %v1455_v34 = vsel %vm1430_vm5, %v3452_v61, %v813_v46 }
 0x229   : > { %v1552_v22 = vsel %vm1529_vm8, %v1519_v29, %v1110_v25 }
 0x22b   : > { %v1212_v54 = vpop.permute.xlu1 %1211 }
 0x22c   : > { %v1112_v62 = vpop.permute.xlu0 %1111  ;;  %v2283_v30 = vpop.f32.mrb[2].mxu0  ;;  %v1585_v51 = vsel %vm1562_vm9, %v1552_v22, %v1212_v54 }
 0x22d   : > { %v1810_v35 = vpop.f32.mrb[3].mxu0  ;;  %v1999_v13 = vmul.f32 %v2283_v30, %v2283_v30  ;;  %v1553_v11 = vsel %vm1529_vm8, %v1520_v26, %v1112_v62 }
 0x22e   : > { %v1960_v52 = vadd.f32 %v1959_v47, %v1810_v35  ;;  %v1998_v7 = vmul.f32 %v1810_v35, %v1810_v35 }
 0x22f   : > { %v915_v0 = vpop.permute.xlu1 %914 }
 0x230   : > { %v2029_v28 = vadd.f32 %v2028_v37, %v1998_v7  ;;  %v815_v38 = vpop.permute.xlu0 %814  ;;  %v1961_v57 = vadd.f32 %v2283_v30, %v1960_v52  ;;  %v1488_v45 = vsel %vm1463_vm6, %v1455_v34, %v915_v0 }
 0x231   : > { %v1456_v61 = vsel %vm1430_vm5, %v3449_v2, %v815_v38 }
 0x232   : > { %v2030_v53 = vadd.f32 %v2029_v28, %v1999_v13 }
 0x233   : > { %v1313_v41 = vpop.permute.xlu1 %1312 }
 0x234   : > { %v1618_v56 = vsel %vm1595_vm10, %v1585_v51, %v1313_v41  ;;  %v1214_v3 = vpop.permute.xlu0 %1213 }
 0x235   : > { %2311 = vmatprep.mubr.msk.f32.mxu1 %vm1633_vm11, %v1618_v56  ;;  %v1586_v50 = vsel %vm1562_vm9, %v1553_v11, %v1214_v3 }
 0x237   : > { %v1016_v36 = vpop.permute.xlu1 %1015 }
 0x238   : > { %v917_v55 = vpop.permute.xlu0 %916  ;;  %v1521_v43 = vsel %vm1496_vm7, %v1488_v45, %v1016_v36 }
 0x239   : > { %v1489_v46 = vsel %vm1463_vm6, %v1456_v61, %v917_v55 }
 0x23b   : > { %v1018_v31 = vpop.permute.xlu1 %1017 }
 0x23c   : > { %v1315_v6 = vpop.permute.xlu0 %1314  ;;  %v1522_v25 = vsel %vm1496_vm7, %v1489_v46, %v1018_v31 }
 0x23d   : > { %v1619_v23 = vsel %vm1595_vm10, %v1586_v50, %v1315_v6 }
 0x23e   : > { %2312 = vmatmul.mubr.msk.f32.gmra.mrb[6].mxu1 %vm1633_vm11, %v1619_v23 }
 0x23f   : > { %v817_v40 = vpop.permute.xlu1 %816 }
 0x240   : > { %v1114_v17 = vpop.permute.xlu0 %1113  ;;  %v2286_v58 = vpop.f32.mrb[4].mxu0  ;;  %v1457_v51 = vsel %vm1430_vm5, %v3468_v49, %v817_v40 }
 0x241   : > { %v1820_v47 = vpop.f32.mrb[5].mxu0  ;;  %v2001_v10 = vmul.f32 %v2286_v58, %v2286_v58  ;;  %v1554_v24 = vsel %vm1529_vm8, %v1521_v43, %v1114_v17 }
 0x242   : > { %v1962_v63 = vadd.f32 %v1961_v57, %v1820_v47  ;;  %v2000_v14 = vmul.f32 %v1820_v47, %v1820_v47 }
 0x243   : > { %v1216_v8 = vpop.permute.xlu1 %1215 }
 0x244   : > { %v2031_v39 = vadd.f32 %v2030_v53, %v2000_v14  ;;  %v1116_v1 = vpop.permute.xlu0 %1115  ;;  %v1963_v18 = vadd.f32 %v2286_v58, %v1962_v63  ;;  %v1587_v27 = vsel %vm1562_vm9, %v1554_v24, %v1216_v8 }
 0x245   : > { %v1555_v54 = vsel %vm1529_vm8, %v1522_v25, %v1116_v1 }
 0x246   : > { %v2032_v37 = vadd.f32 %v2031_v39, %v2001_v10 }
 0x247   : > { %v919_v42 = vpop.permute.xlu1 %918 }
 0x248   : > { %v819_v60 = vpop.permute.xlu0 %818  ;;  %v1490_v56 = vsel %vm1463_vm6, %v1457_v51, %v919_v42 }
 0x249   : > { %v1458_v49 = vsel %vm1430_vm5, %v3465_v33, %v819_v60 }
 0x24b   : > { %v1317_v16 = vpop.permute.xlu1 %1316 }
 0x24c   : > { %v1620_v48 = vsel %vm1595_vm10, %v1587_v27, %v1317_v16  ;;  %v1218_v21 = vpop.permute.xlu0 %1217 }
 0x24d   : > { %2314 = vmatprep.mubr.msk.f32.mxu1 %vm1633_vm11, %v1620_v48  ;;  %v1588_v30 = vsel %vm1562_vm9, %v1555_v54, %v1218_v21 }
 0x24f   : > { %v1020_v59 = vpop.permute.xlu1 %1019 }
 0x250   : > { %v921_v32 = vpop.permute.xlu0 %920  ;;  %v1523_v36 = vsel %vm1496_vm7, %v1490_v56, %v1020_v59 }
 0x251   : > { %v1491_v23 = vsel %vm1463_vm6, %v1458_v49, %v921_v32 }
 0x253   : > { %v1022_v62 = vpop.permute.xlu1 %1021 }
 0x254   : > { %v1319_v35 = vpop.permute.xlu0 %1318  ;;  %v2289_v52 = vpop.f32.mrb[6].mxu0  ;;  %v1524_v17 = vsel %vm1496_vm7, %v1491_v23, %v1022_v62 }
 0x255   : > { %v1621_v7 = vsel %vm1595_vm10, %v1588_v30, %v1319_v35  ;;  %v1830_v15 = vpop.f32.mrb[7].mxu0  ;;  %v2003_v13 = vmul.f32 %v2289_v52, %v2289_v52 }
 0x256   : > { %v1964_v0 = vadd.f32 %v1963_v18, %v1830_v15  ;;  %v2002_v19 = vmul.f32 %v1830_v15, %v1830_v15  ;;  %2315 = vmatmul.mubr.msk.f32.gmra.mrb[8].mxu1 %vm1633_vm11, %v1621_v7 }
 0x257   : > { %v821_v2 = vpop.permute.xlu1 %820 }
 0x258   : > { %v2033_v28 = vadd.f32 %v2032_v37, %v2002_v19  ;;  %v1118_v38 = vpop.permute.xlu0 %1117  ;;  %v1965_v57 = vadd.f32 %v2289_v52, %v1964_v0  ;;  %v1459_v43 = vsel %vm1430_vm5, %v3484_v44, %v821_v2 }
 0x259   : > { %v1556_v5 = vsel %vm1529_vm8, %v1523_v36, %v1118_v38 }
 0x25a   : > { %v2034_v29 = vadd.f32 %v2033_v28, %v2003_v13 }
 0x25b   : > { %v1220_v22 = vpop.permute.xlu1 %1219 }
 0x25c   : > { %v1120_v53 = vpop.permute.xlu0 %1119  ;;  %v1589_v55 = vsel %vm1562_vm9, %v1556_v5, %v1220_v22 }
 0x25d   : > { %v1557_v63 = vsel %vm1529_vm8, %v1524_v17, %v1120_v53 }
 0x25f   : > { %v923_v41 = vpop.permute.xlu1 %922 }
 0x260   : > { %v823_v3 = vpop.permute.xlu0 %822  ;;  %v1492_v27 = vsel %vm1463_vm6, %v1459_v43, %v923_v41 }
 0x261   : > { %v1460_v44 = vsel %vm1430_vm5, %v3481_v9, %v823_v3 }
 0x263   : > { %v1321_v20 = vpop.permute.xlu1 %1320 }
 0x264   : > { %v1622_v26 = vsel %vm1595_vm10, %v1589_v55, %v1321_v20  ;;  %v1222_v11 = vpop.permute.xlu0 %1221 }
 0x265   : > { %2317 = vmatprep.mubr.msk.f32.mxu1 %vm1633_vm11, %v1622_v26  ;;  %v1590_v8 = vsel %vm1562_vm9, %v1557_v63, %v1222_v11 }
 0x267   : > { %v1024_v31 = vpop.permute.xlu1 %1023 }
 0x268   : > { %v925_v50 = vpop.permute.xlu0 %924  ;;  %v2292_v6 = vpop.f32.mrb[8].mxu0  ;;  %v1525_v48 = vsel %vm1496_vm7, %v1492_v27, %v1024_v31 }
 0x269   : > { %v1840_v40 = vpop.f32.mrb[9].mxu0  ;;  %v2005_v10 = vmul.f32 %v2292_v6, %v2292_v6  ;;  %v1493_v62 = vsel %vm1463_vm6, %v1460_v44, %v925_v50 }
 0x26a   : > { %v1966_v58 = vadd.f32 %v1965_v57, %v1840_v40  ;;  %v2004_v47 = vmul.f32 %v1840_v40, %v1840_v40 }
 0x26b   : > { %v1026_v14 = vpop.permute.xlu1 %1025 }
 0x26c   : > { %v2035_v39 = vadd.f32 %v2034_v29, %v2004_v47  ;;  %v1323_v1 = vpop.permute.xlu0 %1322  ;;  %v1967_v18 = vadd.f32 %v2292_v6, %v1966_v58  ;;  %v1526_v35 = vsel %vm1496_vm7, %v1493_v62, %v1026_v14 }
 0x26d   : > { %v1623_v33 = vsel %vm1595_vm10, %v1590_v8, %v1323_v1 }
 0x26e   : > { %2318 = vmatmul.mubr.msk.f32.gmra.mrb[10].mxu1 %vm1633_vm11, %v1623_v33  ;;  %v2036_v37 = vadd.f32 %v2035_v39, %v2005_v10 }
 0x26f   : > { %v825_v34 = vpop.permute.xlu1 %824 }
 0x270   : > { %v1122_v42 = vpop.permute.xlu0 %1121  ;;  %v1461_v56 = vsel %vm1430_vm5, %v3500_v4, %v825_v34 }
 0x271   : > { %v1558_v21 = vsel %vm1529_vm8, %v1525_v48, %v1122_v42 }
 0x273   : > { %v1224_v45 = vpop.permute.xlu1 %1223 }
 0x274   : > { %v1124_v60 = vpop.permute.xlu0 %1123  ;;  %v1591_v59 = vsel %vm1562_vm9, %v1558_v21, %v1224_v45 }
 0x275   : > { %v1559_v7 = vsel %vm1529_vm8, %v1526_v35, %v1124_v60 }
 0x277   : > { %v927_v24 = vpop.permute.xlu1 %926 }
 0x278   : > { %v827_v16 = vpop.permute.xlu0 %826  ;;  %v1494_v5 = vsel %vm1463_vm6, %v1461_v56, %v927_v24 }
 0x279   : > { %v1462_v51 = vsel %vm1430_vm5, %v3497_v12, %v827_v16 }
 0x27b   : > { %v1325_v61 = vpop.permute.xlu1 %1324 }
 0x27c   : > { %v1624_v32 = vsel %vm1595_vm10, %v1591_v59, %v1325_v61  ;;  %v1226_v46 = vpop.permute.xlu0 %1225 }
 0x27d   : > { %2320 = vmatprep.mubr.msk.f32.mxu1 %vm1633_vm11, %v1624_v32  ;;  %v1592_v2 = vsel %vm1562_vm9, %v1559_v7, %v1226_v46 }
 0x27f   : > { %v1028_v25 = vpop.permute.xlu1 %1027 }
 0x280   : > { %v929_v54 = vpop.permute.xlu0 %928  ;;  %v1527_v20 = vsel %vm1496_vm7, %v1494_v5, %v1028_v25 }
 0x281   : > { %v2295_v30 = vpop.f32.mrb[10].mxu0  ;;  %v1495_v3 = vsel %vm1463_vm6, %v1462_v51, %v929_v54 }
 0x282   : > { %v1850_v52 = vpop.f32.mrb[11].mxu0  ;;  %v2007_v28 = vmul.f32 %v2295_v30, %v2295_v30 }
 0x283   : > { %v1968_v15 = vadd.f32 %v1967_v18, %v1850_v52  ;;  %v2006_v0 = vmul.f32 %v1850_v52, %v1850_v52  ;;  %v1030_v19 = vpop.permute.xlu1 %1029 }
 0x284   : > { %v1327_v13 = vpop.permute.xlu0 %1326  ;;  %v1528_v55 = vsel %vm1496_vm7, %v1495_v3, %v1030_v19 }
 0x285   : > { %v2037_v38 = vadd.f32 %v2036_v37, %v2006_v0  ;;  %v1625_v57 = vsel %vm1595_vm10, %v1592_v2, %v1327_v13  ;;  %v1969_v9 = vadd.f32 %v2295_v30, %v1968_v15  ;;  %v2514_v30 = vmov 0.0  }
 0x286   : > { %2321 = vmatmul.mubr.msk.f32.gmra.mrb[12].mxu1 %vm1633_vm11, %v1625_v57  ;;  %305 = vst [vmem:[%s4098_s6] sm:$0x3] %v2514_v30 }
 0x287   : > { %v1128_v29 = vpop.permute.xlu1 %1127  ;;  %v2038_v22 = vadd.f32 %v2037_v38, %v2007_v28 }
 0x288   : > { %v1126_v53 = vpop.permute.xlu0 %1125  ;;  %v1561_v26 = vsel %vm1529_vm8, %v1528_v55, %v1128_v29 }
 0x289   : > { %v1560_v11 = vsel %vm1529_vm8, %v1527_v20, %v1126_v53 }
 0x28b   : > { %v1230_v41 = vpop.permute.xlu1 %1229 }
 0x28c   : > { %v1228_v36 = vpop.permute.xlu0 %1227  ;;  %v1594_v31 = vsel %vm1562_vm9, %v1561_v26, %v1230_v41 }
 0x28d   : > { %v1593_v49 = vsel %vm1562_vm9, %v1560_v11, %v1228_v36 }
 0x28f   : > { %v1331_v12 = vpop.permute.xlu1 %1330 }
 0x290   : > { %v1627_v4 = vsel %vm1595_vm10, %v1594_v31, %v1331_v12  ;;  %v1329_v50 = vpop.permute.xlu0 %1328 }
 0x291   : > { %v1626_v6 = vsel %vm1595_vm10, %v1593_v49, %v1329_v50 }
 0x292   : > { %2323 = vmatprep.mubr.msk.f32.mxu1 %vm1633_vm11, %v1626_v6 }
 0x293   : > { %2324 = vmatmul.mubr.msk.f32.gmra.mrb[14].mxu1 %vm1633_vm11, %v1627_v4 }
 0x299   : > { %v2298_v23 = vpop.f32.mrb[12].mxu0 }
 0x29a   : > { %v1860_v40 = vpop.f32.mrb[13].mxu0  ;;  %v2009_v47 = vmul.f32 %v2298_v23, %v2298_v23 }
 0x29b   : > { %v1970_v17 = vadd.f32 %v1969_v9, %v1860_v40  ;;  %v2008_v58 = vmul.f32 %v1860_v40, %v1860_v40 }
 0x29d   : > { %v2039_v63 = vadd.f32 %v2038_v22, %v2008_v58  ;;  %v1971_v14 = vadd.f32 %v2298_v23, %v1970_v17 }
 0x29f   : > { %v2040_v8 = vadd.f32 %v2039_v63, %v2009_v47 }
 0x2b1   : > { %v2301_v10 = vpop.f32.mrb[14].mxu0 }
 0x2b2   : > { %v1870_v39 = vpop.f32.mrb[15].mxu0  ;;  %v2011_v33 = vmul.f32 %v2301_v10, %v2301_v10 }
 0x2b3   : > { %v1972_v1 = vadd.f32 %v1971_v14, %v1870_v39  ;;  %v2010_v18 = vmul.f32 %v1870_v39, %v1870_v39 }
 0x2b5   : > { %v1973_v37 = vadd.f32 %v2301_v10, %v1972_v1  ;;  %v2041_v34 = vadd.f32 %v2040_v8, %v2010_v18 }
 0x2b7   : > { %v2042_v42 = vadd.f32 %v2041_v34, %v2011_v33 }
 0x2c9   : > { %v2304_v45 = vpop.f32.mrb[0].mxu1 }
 0x2ca   : > { %v1880_v60 = vpop.f32.mrb[1].mxu1  ;;  %v2013_v27 = vmul.f32 %v2304_v45, %v2304_v45 }
 0x2cb   : > { %v1974_v43 = vadd.f32 %v1973_v37, %v1880_v60  ;;  %v2012_v24 = vmul.f32 %v1880_v60, %v1880_v60 }
 0x2cd   : > { %v2043_v16 = vadd.f32 %v2042_v42, %v2012_v24  ;;  %v1975_v48 = vadd.f32 %v2304_v45, %v1974_v43 }
 0x2cf   : > { %v2044_v21 = vadd.f32 %v2043_v16, %v2013_v27 }
 0x2e1   : > { %v2307_v59 = vpop.f32.mrb[2].mxu1 }
 0x2e2   : > { %v1890_v61 = vpop.f32.mrb[3].mxu1  ;;  %v2015_v25 = vmul.f32 %v2307_v59, %v2307_v59 }
 0x2e3   : > { %v1976_v32 = vadd.f32 %v1975_v48, %v1890_v61  ;;  %v2014_v46 = vmul.f32 %v1890_v61, %v1890_v61 }
 0x2e5   : > { %v2045_v44 = vadd.f32 %v2044_v21, %v2014_v46  ;;  %v1977_v54 = vadd.f32 %v2307_v59, %v1976_v32 }
 0x2e7   : > { %v2046_v62 = vadd.f32 %v2045_v44, %v2015_v25  ;;  %v2065_v44 = vld [vmem:[%s4098_s6] sm:$0x3] }
 0x2f9   : > { %v2310_v35 = vpop.f32.mrb[4].mxu1 }
 0x2fa   : > { %v1900_v52 = vpop.f32.mrb[5].mxu1  ;;  %v2017_v0 = vmul.f32 %v2310_v35, %v2310_v35 }
 0x2fb   : > { %v1978_v7 = vadd.f32 %v1977_v54, %v1900_v52  ;;  %v2016_v15 = vmul.f32 %v1900_v52, %v1900_v52 }
 0x2fd   : > { %v2047_v19 = vadd.f32 %v2046_v62, %v2016_v15  ;;  %v1979_v2 = vadd.f32 %v2310_v35, %v1978_v7 }
 0x2ff   : > { %v2048_v13 = vadd.f32 %v2047_v19, %v2017_v0 }
 0x311   : > { %v2313_v28 = vpop.f32.mrb[6].mxu1 }
 0x312   : > { %v1910_v38 = vpop.f32.mrb[7].mxu1  ;;  %v2019_v29 = vmul.f32 %v2313_v28, %v2313_v28 }
 0x313   : > { %v1980_v57 = vadd.f32 %v1979_v2, %v1910_v38  ;;  %v2018_v9 = vmul.f32 %v1910_v38, %v1910_v38 }
 0x315   : > { %v2049_v22 = vadd.f32 %v2048_v13, %v2018_v9  ;;  %v1981_v53 = vadd.f32 %v2313_v28, %v1980_v57 }
 0x317   : > { %v2050_v51 = vadd.f32 %v2049_v22, %v2019_v29 }
 0x329   : > { %v2316_v41 = vpop.f32.mrb[8].mxu1 }
 0x32a   : > { %v1920_v56 = vpop.f32.mrb[9].mxu1  ;;  %v2021_v5 = vmul.f32 %v2316_v41, %v2316_v41 }
 0x32b   : > { %v1982_v3 = vadd.f32 %v1981_v53, %v1920_v56  ;;  %v2020_v36 = vmul.f32 %v1920_v56, %v1920_v56 }
 0x32d   : > { %v2051_v55 = vadd.f32 %v2050_v51, %v2020_v36  ;;  %v1983_v20 = vadd.f32 %v2316_v41, %v1982_v3 }
 0x32f   : > { %v2052_v26 = vadd.f32 %v2051_v55, %v2021_v5 }
 0x341   : > { %v2319_v11 = vpop.f32.mrb[10].mxu1 }
 0x342   : > { %v1930_v31 = vpop.f32.mrb[11].mxu1  ;;  %v2023_v4 = vmul.f32 %v2319_v11, %v2319_v11 }
 0x343   : > { %v1984_v12 = vadd.f32 %v1983_v20, %v1930_v31  ;;  %v2022_v49 = vmul.f32 %v1930_v31, %v1930_v31 }
 0x345   : > { %v2053_v50 = vadd.f32 %v2052_v26, %v2022_v49  ;;  %v1985_v6 = vadd.f32 %v2319_v11, %v1984_v12 }
 0x347   : > { %v2054_v23 = vadd.f32 %v2053_v50, %v2023_v4 }
 0x359   : > { %v2322_v40 = vpop.f32.mrb[12].mxu1 }
 0x35a   : > { %v1940_v17 = vpop.f32.mrb[13].mxu1  ;;  %v2025_v63 = vmul.f32 %v2322_v40, %v2322_v40 }
 0x35b   : > { %v1986_v58 = vadd.f32 %v1985_v6, %v1940_v17  ;;  %v2024_v47 = vmul.f32 %v1940_v17, %v1940_v17 }
 0x35d   : > { %v2055_v14 = vadd.f32 %v2054_v23, %v2024_v47  ;;  %v1987_v8 = vadd.f32 %v2322_v40, %v1986_v58 }
 0x35f   : > { %v2056_v10 = vadd.f32 %v2055_v14, %v2025_v63 }
 0x366   : > { %v2325_v39 = vpop.f32.mrb[14].mxu1 }
 0x367   : > { %v1950_v1 = vpop.f32.mrb[15].mxu1  ;;  %v2027_v37 = vmul.f32 %v2325_v39, %v2325_v39 }
 0x368   : > { %v1988_v18 = vadd.f32 %v1987_v8, %v1950_v1  ;;  %v2026_v33 = vmul.f32 %v1950_v1, %v1950_v1 }
 0x36a   : > { %v1989_v34 = vadd.f32 %v2325_v39, %v1988_v18  ;;  %v2057_v42 = vadd.f32 %v2056_v10, %v2026_v33 }
 0x36c   : > { %v1990_v45 = vrot.slane %v1989_v34, 4  ;;  %v2058_v60 = vadd.f32 %v2057_v42, %v2027_v37 }
 0x36e   : > { %v1991_v43 = vadd.f32 %v1990_v45, %v1989_v34  ;;  %v2059_v24 = vrot.slane %v2058_v60, 4 }
 0x370   : > { %v1992_v27 = vrot.slane %v1991_v43, 2  ;;  %v2060_v16 = vadd.f32 %v2059_v24, %v2058_v60 }
 0x372   : > { %v1993_v48 = vadd.f32 %v1992_v27, %v1991_v43  ;;  %v2061_v21 = vrot.slane %v2060_v16, 2 }
 0x374   : > { %v1994_v59 = vrot.slane %v1993_v48, 1  ;;  %v2062_v61 = vadd.f32 %v2061_v21, %v2060_v16 }
 0x376   : > { %v2063_v32 = vrot.slane %v2062_v61, 1  ;;  %v1995_v46 = vadd.f32 %v1994_v59, %v1993_v48 }
 0x378   : > { %v2064_v25 = vadd.f32 %v2063_v32, %v2062_v61 }
 0x37a   : > { %v2067_v54 = vsel %vm2066_vm12, %v1995_v46, %v2064_v25 }
 0x37b   : > { %v2068_v62 = vadd.f32 %v2067_v54, %v2065_v44 }
 0x37d   : > { %2069 = vst [vmem:[%s4098_s6] sm:$0x3] %v2068_v62 }
 0x37e   : > { %2439 = shalt.err (!%p2436_p5)
}
 0x37f   : > { %s2440_s9 = scalar_lea.hbm %s4107_s28, 32  ;;  %s2444_s11 = scalar_lea.hbm %s4160_s3, 64 }
 0x380   : > { %p2441_p6 = scmp.ne.s32.totalorder %s4107_s28, %s2440_s9  ;;  %p2445_p10 = scmp.lt.u32.totalorder %s4107_s28, %s4160_s3 }
 0x381   : > { %p2446_p11 = scmp.lt.u32.totalorder %s2444_s11, %s2440_s9  ;;  %p2448_p13 = scmp.lt.u32.totalorder %s2440_s9, %s4107_s28 }
 0x382   : > { %p2442_p7 = pnand %p2441_p6, %p2576_p4 }
 0x383   : > { %p2447_p12 = por %p2446_p11, %p2445_p10 }
 0x384   : > { %p2443_p9 = pneg %p2442_p7 }
 0x385   : > { %p2449_p0 = por %p2448_p13, %p2447_p12 }
 0x387   : > { %p2450_p1 = pnand %p2449_p0, %p2443_p9 }
 0x389   : > { %2453 = shalt.err (!%p2450_p1)
}
 0x38a   : > { %2342 = dma.vmem_to_hbm [thread:$0]  (%p2576_p4), %s4109_s18, 32, %s4107_s28, %s2071_s29  }
 0x38b PF: > { %p2349_p2 = scmp.ge.s32.totalorder %s2504_s17, 2  ;;  %s2096_s27 = sand.u32 1, %s2484_s12  }
 0x38c   : > { %s2097_s6 = scalar_lea.sflag [#allocation3], %s2096_s27 }
 0x38d   : > { %p2345_p3 = pnand %p2349_p2, %p2583_p8 }
 0x38f   : > { %2479 = dma.done.wait (!%p2345_p3), %s2097_s6, 32  }
 0x390   : > { %2481 = vsyncadd (!%p2345_p3), %s2097_s6, 4294967264  ;;  %s16_s17 = sadd.s32 1, %s2504_s17   ;;  %s4370_s12 = smov %s2488_s13 }
 0x391   : > { %p13_p5 = scmp.ge.s32.totalorder %s16_s17, 4   ;;  %s4371_s13 = smov %s2492_s14 }
 0x392   : > { %s4372_s14 = smov %s2589_s25  ;;  %s4373_s15 = smov %s2500_s16 }
 0x393   : > { %s4374_s16 = smov %s4376_s20  ;;  %15 = sbr.rel (!%p13_p5) target bundleno = 4 (0x4), region = 74 }
 0x39a   :  { %2102 = vsyncpa [#allocation3], 1 }
 0x39b   :  { %2104 = vsyncpa [#allocation3 + $0x1], 1 }

</bundles_post_ra>
